<compile_context>
chip_gen: v7x
topology: tpu7x:2x2x1
jax: 0.10.0
libtpu: 0.0.40
codegen_flags: <defaults>
</compile_context>

<pallas_src>
import functools

import jax
import jax.numpy as jnp
from jax import lax
from jax.experimental import pallas as pl
from jax.experimental.pallas import tpu as pltpu


def _layer_norm(y, gamma, beta, eps=1e-5):
    mu = jnp.mean(y, axis=-1, keepdims=True)
    var = jnp.mean((y - mu) ** 2, axis=-1, keepdims=True)
    return (y - mu) * lax.rsqrt(var + eps) * gamma + beta


def transformer_block_kernel(
    x_ref,        # (L, N, E)  f32   seq-first activations (full block)
    wqkv_ref,     # (E, 3E)    bf16  fused q/k/v projection
    bqkv_ref,     # (1, 3E)    f32   fused q/k/v bias
    wo_ref,       # (E, E)     bf16  out_proj.weight^T
    bo_ref,       # (1, E)     f32
    w1_ref,       # (E, 4E)    bf16
    b1_ref,       # (1, 4E)    f32
    w2_ref,       # (4E, E)    bf16
    b2_ref,       # (1, E)     f32
    g1_ref, beta1_ref, g2_ref, beta2_ref,   # (1, E) f32
    out_ref,      # (L, N, E)  f32
    *, num_heads, head_dim, seq_len, batch,
):
    L, N, H, Dh = seq_len, batch, num_heads, head_dim
    E = H * Dh
    scale = 1.0 / (Dh ** 0.5)

    # Stack both batches along rows: all row-wise math (projections, LN, FFN)
    # runs once on (N*L, E) instead of N times on (L, E).
    x_all = jnp.concatenate([x_ref[:, n, :] for n in range(N)], axis=0)  # (N*L, E)
    xb = x_all.astype(jnp.bfloat16)                  # cast once (hoisted)

    # ---- fused QKV projection: one bf16 MXU matmul, f32 accumulation ----
    qkv = jnp.dot(xb, wqkv_ref[...],
                  preferred_element_type=jnp.float32) + bqkv_ref[...]   # (N*L, 3E)
    q = qkv[:, 0 * E:1 * E]
    k = qkv[:, 1 * E:2 * E]
    v = qkv[:, 2 * E:3 * E]

    # ---- attention: unrolled over (batch, head) inside this single step ----
    # Kept as 2-D (L, Dh)/(L, L) tiles with static slices: avoids the
    # lane-splitting reshapes a batched 3-D dot_general would need at Dh=8.
    o_rows = []
    for n in range(N):
        rows = slice(n * L, (n + 1) * L)
        head_outs = []
        for h in range(H):
            cols = slice(h * Dh, (h + 1) * Dh)
            qh = q[rows, cols].astype(jnp.bfloat16)          # (L, Dh)
            kh = k[rows, cols].astype(jnp.bfloat16)
            vh = v[rows, cols].astype(jnp.bfloat16)
            # q @ k^T: contract last dims of both operands (no materialized
            # transpose / XLU relayout).
            s = lax.dot_general(
                qh, kh, dimension_numbers=(((1,), (1,)), ((), ())),
                preferred_element_type=jnp.float32) * scale   # (L, L) f32
            # softmax in f32, EUP reciprocal
            s = s - jnp.max(s, axis=-1, keepdims=True)
            p = jnp.exp(s)
            p = p * pl.reciprocal(jnp.sum(p, axis=-1, keepdims=True), approx=True)
            head_outs.append(
                jnp.dot(p.astype(jnp.bfloat16), vh,
                        preferred_element_type=jnp.float32))  # (L, Dh)
        o_rows.append(jnp.concatenate(head_outs, axis=-1))    # (L, E)
    o_all = jnp.concatenate(o_rows, axis=0)                   # (N*L, E)

    # ---- output projection + residual + LN1 ----
    attn = jnp.dot(o_all.astype(jnp.bfloat16), wo_ref[...],
                   preferred_element_type=jnp.float32) + bo_ref[...]
    y = _layer_norm(x_all + attn, g1_ref[...], beta1_ref[...])

    # ---- FFN + residual + LN2 (all N*L rows at once) ----
    yb = y.astype(jnp.bfloat16)
    h1 = jnp.dot(yb, w1_ref[...], preferred_element_type=jnp.float32) + b1_ref[...]
    h1 = jnp.maximum(h1, 0.0)
    ff = jnp.dot(h1.astype(jnp.bfloat16), w2_ref[...],
                 preferred_element_type=jnp.float32) + b2_ref[...]
    z = _layer_norm(y + ff, g2_ref[...], beta2_ref[...])

    # ---- store back in seq-first layout ----
    for n in range(N):
        out_ref[:, n, :] = z[n * L:(n + 1) * L, :]


def _prepare_kernel_params(params):
    """bf16 weights for the MXU (half the DMA/VMEM); biases & LN stay f32."""
    return {
        "wqkv": params["wqkv_t"].astype(jnp.bfloat16),
        "bqkv": params["bqkv"],
        "wo":   params["wo_t"].astype(jnp.bfloat16),
        "bo":   params["bo"],
        "w1":   params["w1_t"].astype(jnp.bfloat16),
        "b1":   params["b1"],
        "w2":   params["w2_t"].astype(jnp.bfloat16),
        "b2":   params["b2"],
        "g1":   params["g1"], "beta1": params["beta1"],
        "g2":   params["g2"], "beta2": params["beta2"],
    }


def transformer_block(x_lne, params, num_heads):
    """x_lne: (L, N, E) float32, PyTorch MHA seq-first layout (in and out)."""
    L, N, E = x_lne.shape
    H = num_heads
    Dh = E // H
    kp = _prepare_kernel_params(params)

    def full(a):   # full-array constant block (DMA'd once)
        return pl.BlockSpec(a.shape, lambda i, nd=a.ndim: (0,) * nd)

    kernel = functools.partial(
        transformer_block_kernel,
        num_heads=H, head_dim=Dh, seq_len=L, batch=N)

    return pl.pallas_call(
        kernel,
        out_shape=jax.ShapeDtypeStruct((L, N, E), jnp.float32),
        grid_spec=pltpu.PrefetchScalarGridSpec(
            num_scalar_prefetch=0,
            grid=(1,),   # single step; see header note on v7x batch sharding
            in_specs=[
                full(x_lne),
                full(kp["wqkv"]), full(kp["bqkv"]),
                full(kp["wo"]), full(kp["bo"]),
                full(kp["w1"]), full(kp["b1"]),
                full(kp["w2"]), full(kp["b2"]),
                full(kp["g1"]), full(kp["beta1"]),
                full(kp["g2"]), full(kp["beta2"]),
            ],
            out_specs=pl.BlockSpec((L, N, E), lambda i: (0, 0, 0)),
        ),
        compiler_params=pltpu.CompilerParams(
            dimension_semantics=("arbitrary",),
            vmem_limit_bytes=32 * 1024 * 1024,
        ),
    )(
        x_lne,
        kp["wqkv"], kp["bqkv"],
        kp["wo"], kp["bo"],
        kp["w1"], kp["b1"], kp["w2"], kp["b2"],
        kp["g1"], kp["beta1"], kp["g2"], kp["beta2"],
    )


def reference_block(x_lne, params, num_heads):
    """Pure-JAX f32 reference mirroring PyTorch semantics."""
    L, N, E = x_lne.shape
    Dh = E // num_heads
    scale = 1.0 / (Dh ** 0.5)
    x = jnp.transpose(x_lne, (1, 0, 2))        # (N, L, E)

    qkv = x @ params["wqkv_t"] + params["bqkv"]
    q, k, v = jnp.split(qkv, 3, axis=-1)

    def split_heads(t):   # (N, L, E) -> (N, H, L, Dh)
        return jnp.transpose(t.reshape(N, L, num_heads, Dh), (0, 2, 1, 3))

    qh, kh, vh = split_heads(q) * scale, split_heads(k), split_heads(v)
    s = jnp.einsum("nhld,nhmd->nhlm", qh, kh)
    p = jax.nn.softmax(s, axis=-1)
    o = jnp.einsum("nhlm,nhmd->nhld", p, vh)
    o = jnp.transpose(o, (0, 2, 1, 3)).reshape(N, L, E)
    attn = o @ params["wo_t"] + params["bo"]

    def ln(y, g, b, eps=1e-5):
        mu = jnp.mean(y, axis=-1, keepdims=True)
        var = jnp.mean((y - mu) ** 2, axis=-1, keepdims=True)
        return (y - mu) / jnp.sqrt(var + eps) * g + b

    y = ln(x + attn, params["g1"], params["beta1"])
    ff = jnp.maximum(y @ params["w1_t"] + params["b1"], 0.0) @ params["w2_t"] + params["b2"]
    z = ln(y + ff, params["g2"], params["beta2"])
    return jnp.transpose(z, (1, 0, 2))


def init_params(key, embed_dim):
    E = embed_dim
    keys = jax.random.split(key, 8)
    s = 0.05
    return {
        # attention in/out projections (stored pre-transposed for x @ W_t)
        "wqkv_t": jax.random.normal(keys[0], (E, 3 * E), jnp.float32) * s,
        "bqkv":   jax.random.normal(keys[1], (1, 3 * E), jnp.float32) * s,
        "wo_t":   jax.random.normal(keys[2], (E, E), jnp.float32) * s,
        "bo":     jax.random.normal(keys[3], (1, E), jnp.float32) * s,
        # feed-forward
        "w1_t":   jax.random.normal(keys[4], (E, 4 * E), jnp.float32) * s,
        "b1":     jax.random.normal(keys[5], (1, 4 * E), jnp.float32) * s,
        "w2_t":   jax.random.normal(keys[6], (4 * E, E), jnp.float32) * s,
        "b2":     jax.random.normal(keys[7], (1, E), jnp.float32) * s,
        # layer norms (PyTorch default init: weight=1, bias=0)
        "g1":     jnp.ones((1, E), jnp.float32),
        "beta1":  jnp.zeros((1, E), jnp.float32),
        "g2":     jnp.ones((1, E), jnp.float32),
        "beta2":  jnp.zeros((1, E), jnp.float32),
    }


if __name__ == "__main__":
    EMBED_DIM = 32
    NUM_HEADS = 4
    SEQ = 8
    BATCH = 2

    key = jax.random.PRNGKey(0)
    kx, kp = jax.random.split(key)
    x = jax.random.normal(kx, (SEQ, BATCH, EMBED_DIM), jnp.float32)  # (L, N, E)
    params = init_params(kp, EMBED_DIM)

    out = jax.block_until_ready(transformer_block(x, params, NUM_HEADS))
    ref = jax.block_until_ready(reference_block(x, params, NUM_HEADS))

    assert out.shape == (SEQ, BATCH, EMBED_DIM)
    # bf16 MXU operands + approx reciprocal vs. a pure-f32 reference -> ~1e-3
    # level differences; 2e-2 tolerance leaves comfortable margin.
    max_err = float(jnp.max(jnp.abs(out - ref)))
    assert jnp.allclose(out, ref, atol=2e-2, rtol=2e-2), max_err

    print("KERNEL_OK")
</pallas_src>

<mosaic_0001>
module attributes {stable_mosaic.version = 11 : i64} {
  func.func @transformer_block_kernel(%arg0: i32, %arg1: memref<8x2x32xf32, #tpu.memory_space<vmem>>, %arg2: memref<32x96xbf16, #tpu.memory_space<vmem>>, %arg3: memref<1x96xf32, #tpu.memory_space<vmem>>, %arg4: memref<32x32xbf16, #tpu.memory_space<vmem>>, %arg5: memref<1x32xf32, #tpu.memory_space<vmem>>, %arg6: memref<32x128xbf16, #tpu.memory_space<vmem>>, %arg7: memref<1x128xf32, #tpu.memory_space<vmem>>, %arg8: memref<128x32xbf16, #tpu.memory_space<vmem>>, %arg9: memref<1x32xf32, #tpu.memory_space<vmem>>, %arg10: memref<1x32xf32, #tpu.memory_space<vmem>>, %arg11: memref<1x32xf32, #tpu.memory_space<vmem>>, %arg12: memref<1x32xf32, #tpu.memory_space<vmem>>, %arg13: memref<1x32xf32, #tpu.memory_space<vmem>>, %arg14: memref<8x2x32xf32, #tpu.memory_space<vmem>>) attributes {dimension_semantics = [#tpu.dimension_semantics<arbitrary>], iteration_bounds = array<i64: 1>, scalar_prefetch = 0 : i64, scratch_operands = 0 : i64, tpu.core_type = #tpu.core_type<tc>, window_params = [{pipeline_mode = #tpu.pipeline_mode<synchronous>, transform_indices = @transform_0, window_bounds = array<i64: 8, 2, 32>}, {pipeline_mode = #tpu.pipeline_mode<synchronous>, transform_indices = @transform_1, window_bounds = array<i64: 32, 96>}, {pipeline_mode = #tpu.pipeline_mode<synchronous>, transform_indices = @transform_2, window_bounds = array<i64: 1, 96>}, {pipeline_mode = #tpu.pipeline_mode<synchronous>, transform_indices = @transform_3, window_bounds = array<i64: 32, 32>}, {pipeline_mode = #tpu.pipeline_mode<synchronous>, transform_indices = @transform_4, window_bounds = array<i64: 1, 32>}, {pipeline_mode = #tpu.pipeline_mode<synchronous>, transform_indices = @transform_5, window_bounds = array<i64: 32, 128>}, {pipeline_mode = #tpu.pipeline_mode<synchronous>, transform_indices = @transform_6, window_bounds = array<i64: 1, 128>}, {pipeline_mode = #tpu.pipeline_mode<synchronous>, transform_indices = @transform_7, window_bounds = array<i64: 128, 32>}, {pipeline_mode = #tpu.pipeline_mode<synchronous>, transform_indices = @transform_8, window_bounds = array<i64: 1, 32>}, {pipeline_mode = #tpu.pipeline_mode<synchronous>, transform_indices = @transform_9, window_bounds = array<i64: 1, 32>}, {pipeline_mode = #tpu.pipeline_mode<synchronous>, transform_indices = @transform_10, window_bounds = array<i64: 1, 32>}, {pipeline_mode = #tpu.pipeline_mode<synchronous>, transform_indices = @transform_11, window_bounds = array<i64: 1, 32>}, {pipeline_mode = #tpu.pipeline_mode<synchronous>, transform_indices = @transform_12, window_bounds = array<i64: 1, 32>}, {pipeline_mode = #tpu.pipeline_mode<synchronous>, transform_indices = @transform_13, window_bounds = array<i64: 8, 2, 32>}]} {
    %c0 = arith.constant 0 : index
    %c0_0 = arith.constant 0 : index
    %c0_1 = arith.constant 0 : index
    %0 = vector.load %arg1[%c0, %c0_0, %c0_1] : memref<8x2x32xf32, #tpu.memory_space<vmem>>, vector<8x1x32xf32>
    %1 = vector.shape_cast %0 : vector<8x1x32xf32> to vector<8x32xf32>
    %c0_2 = arith.constant 0 : index
    %c1 = arith.constant 1 : index
    %c0_3 = arith.constant 0 : index
    %2 = vector.load %arg1[%c0_2, %c1, %c0_3] : memref<8x2x32xf32, #tpu.memory_space<vmem>>, vector<8x1x32xf32>
    %3 = vector.shape_cast %2 : vector<8x1x32xf32> to vector<8x32xf32>
    %4 = tpu.concatenate %1, %3 in 0 : vector<8x32xf32>, vector<8x32xf32> -> vector<16x32xf32>
    %5 = arith.truncf %4 : vector<16x32xf32> to vector<16x32xbf16>
    %c0_4 = arith.constant 0 : index
    %c0_5 = arith.constant 0 : index
    %6 = vector.load %arg2[%c0_4, %c0_5] : memref<32x96xbf16, #tpu.memory_space<vmem>>, vector<32x96xbf16>
    %cst = arith.constant dense<0.000000e+00> : vector<16x96xf32>
    %7 = tpu.matmul %5, %6, %cst {dimension_numbers = #tpu.dot_dimension_numbers<[1], [0], [0], [1], [0, 0, 1, 1], [], []>} : vector<16x32xbf16>, vector<32x96xbf16>, vector<16x96xf32> -> vector<16x96xf32>
    %c0_6 = arith.constant 0 : index
    %c0_7 = arith.constant 0 : index
    %8 = vector.load %arg3[%c0_6, %c0_7] : memref<1x96xf32, #tpu.memory_space<vmem>>, vector<1x96xf32>
    %9 = vector.broadcast %8 : vector<1x96xf32> to vector<16x96xf32>
    %10 = arith.addf %7, %9 : vector<16x96xf32>
    %11 = vector.extract_strided_slice %10 {offsets = [0, 0], sizes = [16, 32], strides = [1, 1]} : vector<16x96xf32> to vector<16x32xf32>
    %12 = vector.extract_strided_slice %10 {offsets = [0, 32], sizes = [16, 32], strides = [1, 1]} : vector<16x96xf32> to vector<16x32xf32>
    %13 = vector.extract_strided_slice %10 {offsets = [0, 64], sizes = [16, 32], strides = [1, 1]} : vector<16x96xf32> to vector<16x32xf32>
    %14 = vector.extract_strided_slice %11 {offsets = [0, 0], sizes = [8, 8], strides = [1, 1]} : vector<16x32xf32> to vector<8x8xf32>
    %15 = arith.truncf %14 : vector<8x8xf32> to vector<8x8xbf16>
    %16 = vector.extract_strided_slice %12 {offsets = [0, 0], sizes = [8, 8], strides = [1, 1]} : vector<16x32xf32> to vector<8x8xf32>
    %17 = arith.truncf %16 : vector<8x8xf32> to vector<8x8xbf16>
    %18 = vector.extract_strided_slice %13 {offsets = [0, 0], sizes = [8, 8], strides = [1, 1]} : vector<16x32xf32> to vector<8x8xf32>
    %19 = arith.truncf %18 : vector<8x8xf32> to vector<8x8xbf16>
    %cst_8 = arith.constant dense<0.000000e+00> : vector<8x8xf32>
    %20 = tpu.matmul %15, %17, %cst_8 {dimension_numbers = #tpu.dot_dimension_numbers<[1], [1], [0], [0], [0, 0, 1, 0], [], []>} : vector<8x8xbf16>, vector<8x8xbf16>, vector<8x8xf32> -> vector<8x8xf32>
    %cst_9 = arith.constant 0.353553385 : f32
    %21 = vector.broadcast %cst_9 : f32 to vector<8x8xf32>
    %22 = arith.mulf %20, %21 : vector<8x8xf32>
    %cst_10 = arith.constant dense<0xFF800000> : vector<8xf32>
    %23 = vector.multi_reduction <maximumf>, %22, %cst_10 [1] : vector<8x8xf32> to vector<8xf32>
    %24 = vector.shape_cast %23 : vector<8xf32> to vector<8x1xf32>
    %25 = vector.broadcast %24 : vector<8x1xf32> to vector<8x8xf32>
    %26 = arith.subf %22, %25 : vector<8x8xf32>
    %27 = math.exp %26 : vector<8x8xf32>
    %cst_11 = arith.constant dense<0.000000e+00> : vector<8xf32>
    %28 = vector.multi_reduction <add>, %27, %cst_11 [1] : vector<8x8xf32> to vector<8xf32>
    %29 = vector.shape_cast %28 : vector<8xf32> to vector<8x1xf32>
    %30 = tpu.reciprocal %29 {approx = true} : vector<8x1xf32> -> vector<8x1xf32>
    %31 = vector.broadcast %30 : vector<8x1xf32> to vector<8x8xf32>
    %32 = arith.mulf %27, %31 : vector<8x8xf32>
    %33 = arith.truncf %32 : vector<8x8xf32> to vector<8x8xbf16>
    %cst_12 = arith.constant dense<0.000000e+00> : vector<8x8xf32>
    %34 = tpu.matmul %33, %19, %cst_12 {dimension_numbers = #tpu.dot_dimension_numbers<[1], [0], [0], [1], [0, 0, 1, 1], [], []>} : vector<8x8xbf16>, vector<8x8xbf16>, vector<8x8xf32> -> vector<8x8xf32>
    %35 = vector.extract_strided_slice %11 {offsets = [0, 8], sizes = [8, 8], strides = [1, 1]} : vector<16x32xf32> to vector<8x8xf32>
    %36 = arith.truncf %35 : vector<8x8xf32> to vector<8x8xbf16>
    %37 = vector.extract_strided_slice %12 {offsets = [0, 8], sizes = [8, 8], strides = [1, 1]} : vector<16x32xf32> to vector<8x8xf32>
    %38 = arith.truncf %37 : vector<8x8xf32> to vector<8x8xbf16>
    %39 = vector.extract_strided_slice %13 {offsets = [0, 8], sizes = [8, 8], strides = [1, 1]} : vector<16x32xf32> to vector<8x8xf32>
    %40 = arith.truncf %39 : vector<8x8xf32> to vector<8x8xbf16>
    %cst_13 = arith.constant dense<0.000000e+00> : vector<8x8xf32>
    %41 = tpu.matmul %36, %38, %cst_13 {dimension_numbers = #tpu.dot_dimension_numbers<[1], [1], [0], [0], [0, 0, 1, 0], [], []>} : vector<8x8xbf16>, vector<8x8xbf16>, vector<8x8xf32> -> vector<8x8xf32>
    %cst_14 = arith.constant 0.353553385 : f32
    %42 = vector.broadcast %cst_14 : f32 to vector<8x8xf32>
    %43 = arith.mulf %41, %42 : vector<8x8xf32>
    %cst_15 = arith.constant dense<0xFF800000> : vector<8xf32>
    %44 = vector.multi_reduction <maximumf>, %43, %cst_15 [1] : vector<8x8xf32> to vector<8xf32>
    %45 = vector.shape_cast %44 : vector<8xf32> to vector<8x1xf32>
    %46 = vector.broadcast %45 : vector<8x1xf32> to vector<8x8xf32>
    %47 = arith.subf %43, %46 : vector<8x8xf32>
    %48 = math.exp %47 : vector<8x8xf32>
    %cst_16 = arith.constant dense<0.000000e+00> : vector<8xf32>
    %49 = vector.multi_reduction <add>, %48, %cst_16 [1] : vector<8x8xf32> to vector<8xf32>
    %50 = vector.shape_cast %49 : vector<8xf32> to vector<8x1xf32>
    %51 = tpu.reciprocal %50 {approx = true} : vector<8x1xf32> -> vector<8x1xf32>
    %52 = vector.broadcast %51 : vector<8x1xf32> to vector<8x8xf32>
    %53 = arith.mulf %48, %52 : vector<8x8xf32>
    %54 = arith.truncf %53 : vector<8x8xf32> to vector<8x8xbf16>
    %cst_17 = arith.constant dense<0.000000e+00> : vector<8x8xf32>
    %55 = tpu.matmul %54, %40, %cst_17 {dimension_numbers = #tpu.dot_dimension_numbers<[1], [0], [0], [1], [0, 0, 1, 1], [], []>} : vector<8x8xbf16>, vector<8x8xbf16>, vector<8x8xf32> -> vector<8x8xf32>
    %56 = vector.extract_strided_slice %11 {offsets = [0, 16], sizes = [8, 8], strides = [1, 1]} : vector<16x32xf32> to vector<8x8xf32>
    %57 = arith.truncf %56 : vector<8x8xf32> to vector<8x8xbf16>
    %58 = vector.extract_strided_slice %12 {offsets = [0, 16], sizes = [8, 8], strides = [1, 1]} : vector<16x32xf32> to vector<8x8xf32>
    %59 = arith.truncf %58 : vector<8x8xf32> to vector<8x8xbf16>
    %60 = vector.extract_strided_slice %13 {offsets = [0, 16], sizes = [8, 8], strides = [1, 1]} : vector<16x32xf32> to vector<8x8xf32>
    %61 = arith.truncf %60 : vector<8x8xf32> to vector<8x8xbf16>
    %cst_18 = arith.constant dense<0.000000e+00> : vector<8x8xf32>
    %62 = tpu.matmul %57, %59, %cst_18 {dimension_numbers = #tpu.dot_dimension_numbers<[1], [1], [0], [0], [0, 0, 1, 0], [], []>} : vector<8x8xbf16>, vector<8x8xbf16>, vector<8x8xf32> -> vector<8x8xf32>
    %cst_19 = arith.constant 0.353553385 : f32
    %63 = vector.broadcast %cst_19 : f32 to vector<8x8xf32>
    %64 = arith.mulf %62, %63 : vector<8x8xf32>
    %cst_20 = arith.constant dense<0xFF800000> : vector<8xf32>
    %65 = vector.multi_reduction <maximumf>, %64, %cst_20 [1] : vector<8x8xf32> to vector<8xf32>
    %66 = vector.shape_cast %65 : vector<8xf32> to vector<8x1xf32>
    %67 = vector.broadcast %66 : vector<8x1xf32> to vector<8x8xf32>
    %68 = arith.subf %64, %67 : vector<8x8xf32>
    %69 = math.exp %68 : vector<8x8xf32>
    %cst_21 = arith.constant dense<0.000000e+00> : vector<8xf32>
    %70 = vector.multi_reduction <add>, %69, %cst_21 [1] : vector<8x8xf32> to vector<8xf32>
    %71 = vector.shape_cast %70 : vector<8xf32> to vector<8x1xf32>
    %72 = tpu.reciprocal %71 {approx = true} : vector<8x1xf32> -> vector<8x1xf32>
    %73 = vector.broadcast %72 : vector<8x1xf32> to vector<8x8xf32>
    %74 = arith.mulf %69, %73 : vector<8x8xf32>
    %75 = arith.truncf %74 : vector<8x8xf32> to vector<8x8xbf16>
    %cst_22 = arith.constant dense<0.000000e+00> : vector<8x8xf32>
    %76 = tpu.matmul %75, %61, %cst_22 {dimension_numbers = #tpu.dot_dimension_numbers<[1], [0], [0], [1], [0, 0, 1, 1], [], []>} : vector<8x8xbf16>, vector<8x8xbf16>, vector<8x8xf32> -> vector<8x8xf32>
    %77 = vector.extract_strided_slice %11 {offsets = [0, 24], sizes = [8, 8], strides = [1, 1]} : vector<16x32xf32> to vector<8x8xf32>
    %78 = arith.truncf %77 : vector<8x8xf32> to vector<8x8xbf16>
    %79 = vector.extract_strided_slice %12 {offsets = [0, 24], sizes = [8, 8], strides = [1, 1]} : vector<16x32xf32> to vector<8x8xf32>
    %80 = arith.truncf %79 : vector<8x8xf32> to vector<8x8xbf16>
    %81 = vector.extract_strided_slice %13 {offsets = [0, 24], sizes = [8, 8], strides = [1, 1]} : vector<16x32xf32> to vector<8x8xf32>
    %82 = arith.truncf %81 : vector<8x8xf32> to vector<8x8xbf16>
    %cst_23 = arith.constant dense<0.000000e+00> : vector<8x8xf32>
    %83 = tpu.matmul %78, %80, %cst_23 {dimension_numbers = #tpu.dot_dimension_numbers<[1], [1], [0], [0], [0, 0, 1, 0], [], []>} : vector<8x8xbf16>, vector<8x8xbf16>, vector<8x8xf32> -> vector<8x8xf32>
    %cst_24 = arith.constant 0.353553385 : f32
    %84 = vector.broadcast %cst_24 : f32 to vector<8x8xf32>
    %85 = arith.mulf %83, %84 : vector<8x8xf32>
    %cst_25 = arith.constant dense<0xFF800000> : vector<8xf32>
    %86 = vector.multi_reduction <maximumf>, %85, %cst_25 [1] : vector<8x8xf32> to vector<8xf32>
    %87 = vector.shape_cast %86 : vector<8xf32> to vector<8x1xf32>
    %88 = vector.broadcast %87 : vector<8x1xf32> to vector<8x8xf32>
    %89 = arith.subf %85, %88 : vector<8x8xf32>
    %90 = math.exp %89 : vector<8x8xf32>
    %cst_26 = arith.constant dense<0.000000e+00> : vector<8xf32>
    %91 = vector.multi_reduction <add>, %90, %cst_26 [1] : vector<8x8xf32> to vector<8xf32>
    %92 = vector.shape_cast %91 : vector<8xf32> to vector<8x1xf32>
    %93 = tpu.reciprocal %92 {approx = true} : vector<8x1xf32> -> vector<8x1xf32>
    %94 = vector.broadcast %93 : vector<8x1xf32> to vector<8x8xf32>
    %95 = arith.mulf %90, %94 : vector<8x8xf32>
    %96 = arith.truncf %95 : vector<8x8xf32> to vector<8x8xbf16>
    %cst_27 = arith.constant dense<0.000000e+00> : vector<8x8xf32>
    %97 = tpu.matmul %96, %82, %cst_27 {dimension_numbers = #tpu.dot_dimension_numbers<[1], [0], [0], [1], [0, 0, 1, 1], [], []>} : vector<8x8xbf16>, vector<8x8xbf16>, vector<8x8xf32> -> vector<8x8xf32>
    %98 = tpu.concatenate %34, %55, %76, %97 in 1 : vector<8x8xf32>, vector<8x8xf32>, vector<8x8xf32>, vector<8x8xf32> -> vector<8x32xf32>
    %99 = vector.extract_strided_slice %11 {offsets = [8, 0], sizes = [8, 8], strides = [1, 1]} : vector<16x32xf32> to vector<8x8xf32>
    %100 = arith.truncf %99 : vector<8x8xf32> to vector<8x8xbf16>
    %101 = vector.extract_strided_slice %12 {offsets = [8, 0], sizes = [8, 8], strides = [1, 1]} : vector<16x32xf32> to vector<8x8xf32>
    %102 = arith.truncf %101 : vector<8x8xf32> to vector<8x8xbf16>
    %103 = vector.extract_strided_slice %13 {offsets = [8, 0], sizes = [8, 8], strides = [1, 1]} : vector<16x32xf32> to vector<8x8xf32>
    %104 = arith.truncf %103 : vector<8x8xf32> to vector<8x8xbf16>
    %cst_28 = arith.constant dense<0.000000e+00> : vector<8x8xf32>
    %105 = tpu.matmul %100, %102, %cst_28 {dimension_numbers = #tpu.dot_dimension_numbers<[1], [1], [0], [0], [0, 0, 1, 0], [], []>} : vector<8x8xbf16>, vector<8x8xbf16>, vector<8x8xf32> -> vector<8x8xf32>
    %cst_29 = arith.constant 0.353553385 : f32
    %106 = vector.broadcast %cst_29 : f32 to vector<8x8xf32>
    %107 = arith.mulf %105, %106 : vector<8x8xf32>
    %cst_30 = arith.constant dense<0xFF800000> : vector<8xf32>
    %108 = vector.multi_reduction <maximumf>, %107, %cst_30 [1] : vector<8x8xf32> to vector<8xf32>
    %109 = vector.shape_cast %108 : vector<8xf32> to vector<8x1xf32>
    %110 = vector.broadcast %109 : vector<8x1xf32> to vector<8x8xf32>
    %111 = arith.subf %107, %110 : vector<8x8xf32>
    %112 = math.exp %111 : vector<8x8xf32>
    %cst_31 = arith.constant dense<0.000000e+00> : vector<8xf32>
    %113 = vector.multi_reduction <add>, %112, %cst_31 [1] : vector<8x8xf32> to vector<8xf32>
    %114 = vector.shape_cast %113 : vector<8xf32> to vector<8x1xf32>
    %115 = tpu.reciprocal %114 {approx = true} : vector<8x1xf32> -> vector<8x1xf32>
    %116 = vector.broadcast %115 : vector<8x1xf32> to vector<8x8xf32>
    %117 = arith.mulf %112, %116 : vector<8x8xf32>
    %118 = arith.truncf %117 : vector<8x8xf32> to vector<8x8xbf16>
    %cst_32 = arith.constant dense<0.000000e+00> : vector<8x8xf32>
    %119 = tpu.matmul %118, %104, %cst_32 {dimension_numbers = #tpu.dot_dimension_numbers<[1], [0], [0], [1], [0, 0, 1, 1], [], []>} : vector<8x8xbf16>, vector<8x8xbf16>, vector<8x8xf32> -> vector<8x8xf32>
    %120 = vector.extract_strided_slice %11 {offsets = [8, 8], sizes = [8, 8], strides = [1, 1]} : vector<16x32xf32> to vector<8x8xf32>
    %121 = arith.truncf %120 : vector<8x8xf32> to vector<8x8xbf16>
    %122 = vector.extract_strided_slice %12 {offsets = [8, 8], sizes = [8, 8], strides = [1, 1]} : vector<16x32xf32> to vector<8x8xf32>
    %123 = arith.truncf %122 : vector<8x8xf32> to vector<8x8xbf16>
    %124 = vector.extract_strided_slice %13 {offsets = [8, 8], sizes = [8, 8], strides = [1, 1]} : vector<16x32xf32> to vector<8x8xf32>
    %125 = arith.truncf %124 : vector<8x8xf32> to vector<8x8xbf16>
    %cst_33 = arith.constant dense<0.000000e+00> : vector<8x8xf32>
    %126 = tpu.matmul %121, %123, %cst_33 {dimension_numbers = #tpu.dot_dimension_numbers<[1], [1], [0], [0], [0, 0, 1, 0], [], []>} : vector<8x8xbf16>, vector<8x8xbf16>, vector<8x8xf32> -> vector<8x8xf32>
    %cst_34 = arith.constant 0.353553385 : f32
    %127 = vector.broadcast %cst_34 : f32 to vector<8x8xf32>
    %128 = arith.mulf %126, %127 : vector<8x8xf32>
    %cst_35 = arith.constant dense<0xFF800000> : vector<8xf32>
    %129 = vector.multi_reduction <maximumf>, %128, %cst_35 [1] : vector<8x8xf32> to vector<8xf32>
    %130 = vector.shape_cast %129 : vector<8xf32> to vector<8x1xf32>
    %131 = vector.broadcast %130 : vector<8x1xf32> to vector<8x8xf32>
    %132 = arith.subf %128, %131 : vector<8x8xf32>
    %133 = math.exp %132 : vector<8x8xf32>
    %cst_36 = arith.constant dense<0.000000e+00> : vector<8xf32>
    %134 = vector.multi_reduction <add>, %133, %cst_36 [1] : vector<8x8xf32> to vector<8xf32>
    %135 = vector.shape_cast %134 : vector<8xf32> to vector<8x1xf32>
    %136 = tpu.reciprocal %135 {approx = true} : vector<8x1xf32> -> vector<8x1xf32>
    %137 = vector.broadcast %136 : vector<8x1xf32> to vector<8x8xf32>
    %138 = arith.mulf %133, %137 : vector<8x8xf32>
    %139 = arith.truncf %138 : vector<8x8xf32> to vector<8x8xbf16>
    %cst_37 = arith.constant dense<0.000000e+00> : vector<8x8xf32>
    %140 = tpu.matmul %139, %125, %cst_37 {dimension_numbers = #tpu.dot_dimension_numbers<[1], [0], [0], [1], [0, 0, 1, 1], [], []>} : vector<8x8xbf16>, vector<8x8xbf16>, vector<8x8xf32> -> vector<8x8xf32>
    %141 = vector.extract_strided_slice %11 {offsets = [8, 16], sizes = [8, 8], strides = [1, 1]} : vector<16x32xf32> to vector<8x8xf32>
    %142 = arith.truncf %141 : vector<8x8xf32> to vector<8x8xbf16>
    %143 = vector.extract_strided_slice %12 {offsets = [8, 16], sizes = [8, 8], strides = [1, 1]} : vector<16x32xf32> to vector<8x8xf32>
    %144 = arith.truncf %143 : vector<8x8xf32> to vector<8x8xbf16>
    %145 = vector.extract_strided_slice %13 {offsets = [8, 16], sizes = [8, 8], strides = [1, 1]} : vector<16x32xf32> to vector<8x8xf32>
    %146 = arith.truncf %145 : vector<8x8xf32> to vector<8x8xbf16>
    %cst_38 = arith.constant dense<0.000000e+00> : vector<8x8xf32>
    %147 = tpu.matmul %142, %144, %cst_38 {dimension_numbers = #tpu.dot_dimension_numbers<[1], [1], [0], [0], [0, 0, 1, 0], [], []>} : vector<8x8xbf16>, vector<8x8xbf16>, vector<8x8xf32> -> vector<8x8xf32>
    %cst_39 = arith.constant 0.353553385 : f32
    %148 = vector.broadcast %cst_39 : f32 to vector<8x8xf32>
    %149 = arith.mulf %147, %148 : vector<8x8xf32>
    %cst_40 = arith.constant dense<0xFF800000> : vector<8xf32>
    %150 = vector.multi_reduction <maximumf>, %149, %cst_40 [1] : vector<8x8xf32> to vector<8xf32>
    %151 = vector.shape_cast %150 : vector<8xf32> to vector<8x1xf32>
    %152 = vector.broadcast %151 : vector<8x1xf32> to vector<8x8xf32>
    %153 = arith.subf %149, %152 : vector<8x8xf32>
    %154 = math.exp %153 : vector<8x8xf32>
    %cst_41 = arith.constant dense<0.000000e+00> : vector<8xf32>
    %155 = vector.multi_reduction <add>, %154, %cst_41 [1] : vector<8x8xf32> to vector<8xf32>
    %156 = vector.shape_cast %155 : vector<8xf32> to vector<8x1xf32>
    %157 = tpu.reciprocal %156 {approx = true} : vector<8x1xf32> -> vector<8x1xf32>
    %158 = vector.broadcast %157 : vector<8x1xf32> to vector<8x8xf32>
    %159 = arith.mulf %154, %158 : vector<8x8xf32>
    %160 = arith.truncf %159 : vector<8x8xf32> to vector<8x8xbf16>
    %cst_42 = arith.constant dense<0.000000e+00> : vector<8x8xf32>
    %161 = tpu.matmul %160, %146, %cst_42 {dimension_numbers = #tpu.dot_dimension_numbers<[1], [0], [0], [1], [0, 0, 1, 1], [], []>} : vector<8x8xbf16>, vector<8x8xbf16>, vector<8x8xf32> -> vector<8x8xf32>
    %162 = vector.extract_strided_slice %11 {offsets = [8, 24], sizes = [8, 8], strides = [1, 1]} : vector<16x32xf32> to vector<8x8xf32>
    %163 = arith.truncf %162 : vector<8x8xf32> to vector<8x8xbf16>
    %164 = vector.extract_strided_slice %12 {offsets = [8, 24], sizes = [8, 8], strides = [1, 1]} : vector<16x32xf32> to vector<8x8xf32>
    %165 = arith.truncf %164 : vector<8x8xf32> to vector<8x8xbf16>
    %166 = vector.extract_strided_slice %13 {offsets = [8, 24], sizes = [8, 8], strides = [1, 1]} : vector<16x32xf32> to vector<8x8xf32>
    %167 = arith.truncf %166 : vector<8x8xf32> to vector<8x8xbf16>
    %cst_43 = arith.constant dense<0.000000e+00> : vector<8x8xf32>
    %168 = tpu.matmul %163, %165, %cst_43 {dimension_numbers = #tpu.dot_dimension_numbers<[1], [1], [0], [0], [0, 0, 1, 0], [], []>} : vector<8x8xbf16>, vector<8x8xbf16>, vector<8x8xf32> -> vector<8x8xf32>
    %cst_44 = arith.constant 0.353553385 : f32
    %169 = vector.broadcast %cst_44 : f32 to vector<8x8xf32>
    %170 = arith.mulf %168, %169 : vector<8x8xf32>
    %cst_45 = arith.constant dense<0xFF800000> : vector<8xf32>
    %171 = vector.multi_reduction <maximumf>, %170, %cst_45 [1] : vector<8x8xf32> to vector<8xf32>
    %172 = vector.shape_cast %171 : vector<8xf32> to vector<8x1xf32>
    %173 = vector.broadcast %172 : vector<8x1xf32> to vector<8x8xf32>
    %174 = arith.subf %170, %173 : vector<8x8xf32>
    %175 = math.exp %174 : vector<8x8xf32>
    %cst_46 = arith.constant dense<0.000000e+00> : vector<8xf32>
    %176 = vector.multi_reduction <add>, %175, %cst_46 [1] : vector<8x8xf32> to vector<8xf32>
    %177 = vector.shape_cast %176 : vector<8xf32> to vector<8x1xf32>
    %178 = tpu.reciprocal %177 {approx = true} : vector<8x1xf32> -> vector<8x1xf32>
    %179 = vector.broadcast %178 : vector<8x1xf32> to vector<8x8xf32>
    %180 = arith.mulf %175, %179 : vector<8x8xf32>
    %181 = arith.truncf %180 : vector<8x8xf32> to vector<8x8xbf16>
    %cst_47 = arith.constant dense<0.000000e+00> : vector<8x8xf32>
    %182 = tpu.matmul %181, %167, %cst_47 {dimension_numbers = #tpu.dot_dimension_numbers<[1], [0], [0], [1], [0, 0, 1, 1], [], []>} : vector<8x8xbf16>, vector<8x8xbf16>, vector<8x8xf32> -> vector<8x8xf32>
    %183 = tpu.concatenate %119, %140, %161, %182 in 1 : vector<8x8xf32>, vector<8x8xf32>, vector<8x8xf32>, vector<8x8xf32> -> vector<8x32xf32>
    %184 = tpu.concatenate %98, %183 in 0 : vector<8x32xf32>, vector<8x32xf32> -> vector<16x32xf32>
    %185 = arith.truncf %184 : vector<16x32xf32> to vector<16x32xbf16>
    %c0_48 = arith.constant 0 : index
    %c0_49 = arith.constant 0 : index
    %186 = vector.load %arg4[%c0_48, %c0_49] : memref<32x32xbf16, #tpu.memory_space<vmem>>, vector<32x32xbf16>
    %cst_50 = arith.constant dense<0.000000e+00> : vector<16x32xf32>
    %187 = tpu.matmul %185, %186, %cst_50 {dimension_numbers = #tpu.dot_dimension_numbers<[1], [0], [0], [1], [0, 0, 1, 1], [], []>} : vector<16x32xbf16>, vector<32x32xbf16>, vector<16x32xf32> -> vector<16x32xf32>
    %c0_51 = arith.constant 0 : index
    %c0_52 = arith.constant 0 : index
    %188 = vector.load %arg5[%c0_51, %c0_52] : memref<1x32xf32, #tpu.memory_space<vmem>>, vector<1x32xf32>
    %189 = vector.broadcast %188 : vector<1x32xf32> to vector<16x32xf32>
    %190 = arith.addf %187, %189 : vector<16x32xf32>
    %191 = arith.addf %4, %190 : vector<16x32xf32>
    %c0_53 = arith.constant 0 : index
    %c0_54 = arith.constant 0 : index
    %192 = vector.load %arg10[%c0_53, %c0_54] : memref<1x32xf32, #tpu.memory_space<vmem>>, vector<1x32xf32>
    %c0_55 = arith.constant 0 : index
    %c0_56 = arith.constant 0 : index
    %193 = vector.load %arg11[%c0_55, %c0_56] : memref<1x32xf32, #tpu.memory_space<vmem>>, vector<1x32xf32>
    %cst_57 = arith.constant dense<0.000000e+00> : vector<16xf32>
    %194 = vector.multi_reduction <add>, %191, %cst_57 [1] : vector<16x32xf32> to vector<16xf32>
    %195 = vector.shape_cast %194 : vector<16xf32> to vector<16x1xf32>
    %cst_58 = arith.constant 3.200000e+01 : f32
    %196 = vector.broadcast %cst_58 : f32 to vector<16x1xf32>
    %197 = arith.divf %195, %196 : vector<16x1xf32>
    %198 = vector.broadcast %197 : vector<16x1xf32> to vector<16x32xf32>
    %199 = arith.subf %191, %198 : vector<16x32xf32>
    %200 = arith.mulf %199, %199 : vector<16x32xf32>
    %cst_59 = arith.constant dense<0.000000e+00> : vector<16xf32>
    %201 = vector.multi_reduction <add>, %200, %cst_59 [1] : vector<16x32xf32> to vector<16xf32>
    %202 = vector.shape_cast %201 : vector<16xf32> to vector<16x1xf32>
    %cst_60 = arith.constant 3.200000e+01 : f32
    %203 = vector.broadcast %cst_60 : f32 to vector<16x1xf32>
    %204 = arith.divf %202, %203 : vector<16x1xf32>
    %205 = vector.broadcast %197 : vector<16x1xf32> to vector<16x32xf32>
    %206 = arith.subf %191, %205 : vector<16x32xf32>
    %cst_61 = arith.constant 9.99999974E-6 : f32
    %207 = vector.broadcast %cst_61 : f32 to vector<16x1xf32>
    %208 = arith.addf %204, %207 : vector<16x1xf32>
    %209 = math.rsqrt %208 : vector<16x1xf32>
    %210 = vector.broadcast %209 : vector<16x1xf32> to vector<16x32xf32>
    %211 = arith.mulf %206, %210 : vector<16x32xf32>
    %212 = vector.broadcast %192 : vector<1x32xf32> to vector<16x32xf32>
    %213 = arith.mulf %211, %212 : vector<16x32xf32>
    %214 = vector.broadcast %193 : vector<1x32xf32> to vector<16x32xf32>
    %215 = arith.addf %213, %214 : vector<16x32xf32>
    %216 = arith.truncf %215 : vector<16x32xf32> to vector<16x32xbf16>
    %c0_62 = arith.constant 0 : index
    %c0_63 = arith.constant 0 : index
    %217 = vector.load %arg6[%c0_62, %c0_63] : memref<32x128xbf16, #tpu.memory_space<vmem>>, vector<32x128xbf16>
    %cst_64 = arith.constant dense<0.000000e+00> : vector<16x128xf32>
    %218 = tpu.matmul %216, %217, %cst_64 {dimension_numbers = #tpu.dot_dimension_numbers<[1], [0], [0], [1], [0, 0, 1, 1], [], []>} : vector<16x32xbf16>, vector<32x128xbf16>, vector<16x128xf32> -> vector<16x128xf32>
    %c0_65 = arith.constant 0 : index
    %c0_66 = arith.constant 0 : index
    %219 = vector.load %arg7[%c0_65, %c0_66] : memref<1x128xf32, #tpu.memory_space<vmem>>, vector<1x128xf32>
    %220 = vector.broadcast %219 : vector<1x128xf32> to vector<16x128xf32>
    %221 = arith.addf %218, %220 : vector<16x128xf32>
    %cst_67 = arith.constant 0.000000e+00 : f32
    %222 = vector.broadcast %cst_67 : f32 to vector<16x128xf32>
    %223 = arith.maximumf %221, %222 : vector<16x128xf32>
    %224 = arith.truncf %223 : vector<16x128xf32> to vector<16x128xbf16>
    %c0_68 = arith.constant 0 : index
    %c0_69 = arith.constant 0 : index
    %225 = vector.load %arg8[%c0_68, %c0_69] : memref<128x32xbf16, #tpu.memory_space<vmem>>, vector<128x32xbf16>
    %cst_70 = arith.constant dense<0.000000e+00> : vector<16x32xf32>
    %226 = tpu.matmul %224, %225, %cst_70 {dimension_numbers = #tpu.dot_dimension_numbers<[1], [0], [0], [1], [0, 0, 1, 1], [], []>} : vector<16x128xbf16>, vector<128x32xbf16>, vector<16x32xf32> -> vector<16x32xf32>
    %c0_71 = arith.constant 0 : index
    %c0_72 = arith.constant 0 : index
    %227 = vector.load %arg9[%c0_71, %c0_72] : memref<1x32xf32, #tpu.memory_space<vmem>>, vector<1x32xf32>
    %228 = vector.broadcast %227 : vector<1x32xf32> to vector<16x32xf32>
    %229 = arith.addf %226, %228 : vector<16x32xf32>
    %230 = arith.addf %215, %229 : vector<16x32xf32>
    %c0_73 = arith.constant 0 : index
    %c0_74 = arith.constant 0 : index
    %231 = vector.load %arg12[%c0_73, %c0_74] : memref<1x32xf32, #tpu.memory_space<vmem>>, vector<1x32xf32>
    %c0_75 = arith.constant 0 : index
    %c0_76 = arith.constant 0 : index
    %232 = vector.load %arg13[%c0_75, %c0_76] : memref<1x32xf32, #tpu.memory_space<vmem>>, vector<1x32xf32>
    %cst_77 = arith.constant dense<0.000000e+00> : vector<16xf32>
    %233 = vector.multi_reduction <add>, %230, %cst_77 [1] : vector<16x32xf32> to vector<16xf32>
    %234 = vector.shape_cast %233 : vector<16xf32> to vector<16x1xf32>
    %cst_78 = arith.constant 3.200000e+01 : f32
    %235 = vector.broadcast %cst_78 : f32 to vector<16x1xf32>
    %236 = arith.divf %234, %235 : vector<16x1xf32>
    %237 = vector.broadcast %236 : vector<16x1xf32> to vector<16x32xf32>
    %238 = arith.subf %230, %237 : vector<16x32xf32>
    %239 = arith.mulf %238, %238 : vector<16x32xf32>
    %cst_79 = arith.constant dense<0.000000e+00> : vector<16xf32>
    %240 = vector.multi_reduction <add>, %239, %cst_79 [1] : vector<16x32xf32> to vector<16xf32>
    %241 = vector.shape_cast %240 : vector<16xf32> to vector<16x1xf32>
    %cst_80 = arith.constant 3.200000e+01 : f32
    %242 = vector.broadcast %cst_80 : f32 to vector<16x1xf32>
    %243 = arith.divf %241, %242 : vector<16x1xf32>
    %244 = vector.broadcast %236 : vector<16x1xf32> to vector<16x32xf32>
    %245 = arith.subf %230, %244 : vector<16x32xf32>
    %cst_81 = arith.constant 9.99999974E-6 : f32
    %246 = vector.broadcast %cst_81 : f32 to vector<16x1xf32>
    %247 = arith.addf %243, %246 : vector<16x1xf32>
    %248 = math.rsqrt %247 : vector<16x1xf32>
    %249 = vector.broadcast %248 : vector<16x1xf32> to vector<16x32xf32>
    %250 = arith.mulf %245, %249 : vector<16x32xf32>
    %251 = vector.broadcast %231 : vector<1x32xf32> to vector<16x32xf32>
    %252 = arith.mulf %250, %251 : vector<16x32xf32>
    %253 = vector.broadcast %232 : vector<1x32xf32> to vector<16x32xf32>
    %254 = arith.addf %252, %253 : vector<16x32xf32>
    %255 = vector.extract_strided_slice %254 {offsets = [0, 0], sizes = [8, 32], strides = [1, 1]} : vector<16x32xf32> to vector<8x32xf32>
    %c0_82 = arith.constant 0 : index
    %c0_83 = arith.constant 0 : index
    %c0_84 = arith.constant 0 : index
    %256 = vector.load %arg14[%c0_82, %c0_83, %c0_84] : memref<8x2x32xf32, #tpu.memory_space<vmem>>, vector<8x1x32xf32>
    %257 = vector.shape_cast %256 : vector<8x1x32xf32> to vector<8x32xf32>
    %258 = vector.shape_cast %255 : vector<8x32xf32> to vector<8x1x32xf32>
    tpu.vector_store %arg14[%c0_82, %c0_83, %c0_84], %258 {strides = array<i32>} : memref<8x2x32xf32, #tpu.memory_space<vmem>>, vector<8x1x32xf32>,
    %259 = vector.extract_strided_slice %254 {offsets = [8, 0], sizes = [8, 32], strides = [1, 1]} : vector<16x32xf32> to vector<8x32xf32>
    %c0_85 = arith.constant 0 : index
    %c1_86 = arith.constant 1 : index
    %c0_87 = arith.constant 0 : index
    %260 = vector.load %arg14[%c0_85, %c1_86, %c0_87] : memref<8x2x32xf32, #tpu.memory_space<vmem>>, vector<8x1x32xf32>
    %261 = vector.shape_cast %260 : vector<8x1x32xf32> to vector<8x32xf32>
    %262 = vector.shape_cast %259 : vector<8x32xf32> to vector<8x1x32xf32>
    tpu.vector_store %arg14[%c0_85, %c1_86, %c0_87], %262 {strides = array<i32>} : memref<8x2x32xf32, #tpu.memory_space<vmem>>, vector<8x1x32xf32>,
    return
  }
  func.func @transform_0(%arg0: i32) -> (i32, i32, i32) {
    %c0_i32 = arith.constant 0 : i32
    %c0_i32_0 = arith.constant 0 : i32
    %c0_i32_1 = arith.constant 0 : i32
    %c0_i32_2 = arith.constant 0 : i32
    return %c0_i32, %c0_i32_0, %c0_i32_1 : i32, i32, i32
  }
  func.func @transform_1(%arg0: i32) -> (i32, i32) {
    %c0_i32 = arith.constant 0 : i32
    %c0_i32_0 = arith.constant 0 : i32
    %c0_i32_1 = arith.constant 0 : i32
    return %c0_i32, %c0_i32_0 : i32, i32
  }
  func.func @transform_2(%arg0: i32) -> (i32, i32) {
    %c0_i32 = arith.constant 0 : i32
    %c0_i32_0 = arith.constant 0 : i32
    %c0_i32_1 = arith.constant 0 : i32
    return %c0_i32, %c0_i32_0 : i32, i32
  }
  func.func @transform_3(%arg0: i32) -> (i32, i32) {
    %c0_i32 = arith.constant 0 : i32
    %c0_i32_0 = arith.constant 0 : i32
    %c0_i32_1 = arith.constant 0 : i32
    return %c0_i32, %c0_i32_0 : i32, i32
  }
  func.func @transform_4(%arg0: i32) -> (i32, i32) {
    %c0_i32 = arith.constant 0 : i32
    %c0_i32_0 = arith.constant 0 : i32
    %c0_i32_1 = arith.constant 0 : i32
    return %c0_i32, %c0_i32_0 : i32, i32
  }
  func.func @transform_5(%arg0: i32) -> (i32, i32) {
    %c0_i32 = arith.constant 0 : i32
    %c0_i32_0 = arith.constant 0 : i32
    %c0_i32_1 = arith.constant 0 : i32
    return %c0_i32, %c0_i32_0 : i32, i32
  }
  func.func @transform_6(%arg0: i32) -> (i32, i32) {
    %c0_i32 = arith.constant 0 : i32
    %c0_i32_0 = arith.constant 0 : i32
    %c0_i32_1 = arith.constant 0 : i32
    return %c0_i32, %c0_i32_0 : i32, i32
  }
  func.func @transform_7(%arg0: i32) -> (i32, i32) {
    %c0_i32 = arith.constant 0 : i32
    %c0_i32_0 = arith.constant 0 : i32
    %c0_i32_1 = arith.constant 0 : i32
    return %c0_i32, %c0_i32_0 : i32, i32
  }
  func.func @transform_8(%arg0: i32) -> (i32, i32) {
    %c0_i32 = arith.constant 0 : i32
    %c0_i32_0 = arith.constant 0 : i32
    %c0_i32_1 = arith.constant 0 : i32
    return %c0_i32, %c0_i32_0 : i32, i32
  }
  func.func @transform_9(%arg0: i32) -> (i32, i32) {
    %c0_i32 = arith.constant 0 : i32
    %c0_i32_0 = arith.constant 0 : i32
    %c0_i32_1 = arith.constant 0 : i32
    return %c0_i32, %c0_i32_0 : i32, i32
  }
  func.func @transform_10(%arg0: i32) -> (i32, i32) {
    %c0_i32 = arith.constant 0 : i32
    %c0_i32_0 = arith.constant 0 : i32
    %c0_i32_1 = arith.constant 0 : i32
    return %c0_i32, %c0_i32_0 : i32, i32
  }
  func.func @transform_11(%arg0: i32) -> (i32, i32) {
    %c0_i32 = arith.constant 0 : i32
    %c0_i32_0 = arith.constant 0 : i32
    %c0_i32_1 = arith.constant 0 : i32
    return %c0_i32, %c0_i32_0 : i32, i32
  }
  func.func @transform_12(%arg0: i32) -> (i32, i32) {
    %c0_i32 = arith.constant 0 : i32
    %c0_i32_0 = arith.constant 0 : i32
    %c0_i32_1 = arith.constant 0 : i32
    return %c0_i32, %c0_i32_0 : i32, i32
  }
  func.func @transform_13(%arg0: i32) -> (i32, i32, i32) {
    %c0_i32 = arith.constant 0 : i32
    %c0_i32_0 = arith.constant 0 : i32
    %c0_i32_1 = arith.constant 0 : i32
    %c0_i32_2 = arith.constant 0 : i32
    return %c0_i32, %c0_i32_0, %c0_i32_1 : i32, i32, i32
  }
}

</mosaic_0001>

<bundles_post_ra>
// kernel: tpu_custom_call.1
= control target key start
LH: loop header
LB: loop body
LE: loop exit
PB: predicated region body
PF: predicated region fallthrough
CT: control target
= control target key end

     0   :  { %v1943_v1 = vmov 0.0   ;;  %vm1944_vm0 = vmmov 0   ;;  %vm71_vm1 = vcmask 1041409   ;;  %vm74_vm2 = vcmask 1042434   ;;  %s2408_s0 = inlined_call_operand.vmem [shape: f32[8,2,32], index: 0, kind: input, shape index: {}]   ;;  %s2409_s1 = inlined_call_operand.vmem [shape: bf16[32,96], index: 1, kind: input, shape index: {}]   ;;  %s2410_s2 = inlined_call_operand.vmem [shape: f32[1,96], index: 2, kind: input, shape index: {}]   ;;  %s2411_s3 = inlined_call_operand.vmem [shape: bf16[32,32], index: 3, kind: input, shape index: {}]   ;;  %s2412_s4 = inlined_call_operand.vmem [shape: f32[1,32], index: 4, kind: input, shape index: {}]   ;;  %s2413_s5 = inlined_call_operand.vmem [shape: bf16[32,128], index: 5, kind: input, shape index: {}]   ;;  %s2414_s6 = inlined_call_operand.vmem [shape: f32[1,128], index: 6, kind: input, shape index: {}]   ;;  %s2415_s7 = inlined_call_operand.vmem [shape: bf16[128,32], index: 7, kind: input, shape index: {}]   ;;  %s2416_s8 = inlined_call_operand.vmem [shape: f32[1,32], index: 8, kind: input, shape index: {}]   ;;  %s2417_s9 = inlined_call_operand.vmem [shape: f32[1,32], index: 9, kind: input, shape index: {}]   ;;  %s2418_s10 = inlined_call_operand.vmem [shape: f32[1,32], index: 10, kind: input, shape index: {}]   ;;  %s2419_s11 = inlined_call_operand.vmem [shape: f32[1,32], index: 11, kind: input, shape index: {}]   ;;  %s2420_s12 = inlined_call_operand.vmem [shape: f32[1,32], index: 12, kind: input, shape index: {}]   ;;  %s2421_s13 = inlined_call_operand.hbm [shape: f32[8,2,32], index: 13, kind: output, shape index: {}]  }
   0x1   :  { %v1865_v0 = vld [vmem:[%s2409_s1] sm:$0xff]   ;;  %1690 = vmatprep.subr.bf16.mxu0 %v1943_v1  ;;  %1710 = vmatprep.subr.bf16.mxu1 %v1943_v1  ;;  %v1866_v2 = vld [vmem:[%s2409_s1 + $0x8] sm:$0xff]   ;;  %vm77_vm3 = vcmask 1043459   ;;  %vm80_vm4 = vcmask 1044484   ;;  %vm83_vm5 = vcmask 1045509   ;;  %vm86_vm6 = vcmask 1046534  }
   0x2   :  { %1691 = vmatpush3.bf16.msra.mxu0 %v1865_v0  ;;  %1694 = vmatprep.mubr.msk.bf16.mxu0 %vm1944_vm0, %v1943_v1  ;;  %v47_v3 = vld [vmem:[%s2408_s0 + $0x2] sm:$0x1]  ;;  %v46_v4 = vld [vmem:[%s2408_s0] sm:$0x1]  ;;  %v48_v5 = vld [vmem:[%s2408_s0 + $0x4] sm:$0x1] }
   0x3   :  { %1692 = vmatprep.subr.bf16.mxu0 %v1943_v1  ;;  %1712 = vmatprep.mubr.msk.bf16.mxu1 %vm1944_vm0, %v1943_v1  ;;  %v49_v6 = vld [vmem:[%s2408_s0 + $0x6] sm:$0x1]  ;;  %v50_v7 = vld [vmem:[%s2408_s0 + $0x8] sm:$0x1]  ;;  %v51_v8 = vld [vmem:[%s2408_s0 + $0xa] sm:$0x1] }
   0x4   :  { %v52_v9 = vld [vmem:[%s2408_s0 + $0xc] sm:$0x1]  ;;  %v53_v10 = vld [vmem:[%s2408_s0 + $0xe] sm:$0x1]  ;;  %v55_v11 = vld [vmem:[%s2408_s0 + $0x3] sm:$0x1] }
   0x5   :  { %v56_v12 = vld [vmem:[%s2408_s0 + $0x5] sm:$0x1]  ;;  %v57_v13 = vld [vmem:[%s2408_s0 + $0x7] sm:$0x1]  ;;  %v58_v14 = vld [vmem:[%s2408_s0 + $0x9] sm:$0x1] }
   0x6   :  { %1693 = vmatpush3.bf16.msra.mxu0 %v1866_v2  ;;  %v59_v15 = vld [vmem:[%s2408_s0 + $0xb] sm:$0x1]  ;;  %v60_v16 = vld [vmem:[%s2408_s0 + $0xd] sm:$0x1]  ;;  %v70_v17 = vrot.slane %v47_v3, 7  ;;  %v73_v18 = vrot.slane %v48_v5, 6 }
   0x7   :  { %1698 = vmatprep.subr.bf16.mxu0 %v1943_v1  ;;  %v54_v19 = vld [vmem:[%s2408_s0 + $0x1] sm:$0x1]  ;;  %v61_v20 = vld [vmem:[%s2408_s0 + $0xf] sm:$0x1]  ;;  %v76_v21 = vrot.slane %v49_v6, 5  ;;  %v79_v22 = vrot.slane %v50_v7, 4 }
   0x8   :  { %v72_v23 = vsel %vm71_vm1, %v70_v17, %v46_v4  ;;  %v82_v24 = vrot.slane %v51_v8, 3  ;;  %v85_v25 = vrot.slane %v52_v9, 2  ;;  %v88_v27 = vrot.slane %v53_v10, 1 }
   0x9   :  { %v75_v26 = vsel %vm74_vm2, %v73_v18, %v72_v23  ;;  %vm89_vm7 = vcmask 1047559   ;;  %v100_v29 = vrot.slane %v55_v11, 7  ;;  %v102_v30 = vrot.slane %v56_v12, 6 }
   0xa   :  { %v78_v28 = vsel %vm77_vm3, %v76_v21, %v75_v26  ;;  %v104_v31 = vrot.slane %v57_v13, 5  ;;  %v106_v33 = vrot.slane %v58_v14, 4  ;;  %v108_v34 = vrot.slane %v59_v15, 3 }
   0xb   :  { %v81_v32 = vsel %vm80_vm4, %v79_v22, %v78_v28  ;;  %v110_v35 = vrot.slane %v60_v16, 2  ;;  %v101_v37 = vsel %vm71_vm1, %v100_v29, %v54_v19  ;;  %v112_v38 = vrot.slane %v61_v20, 1 }
   0xc   :  { %v84_v36 = vsel %vm83_vm5, %v82_v24, %v81_v32  ;;  %vm139_vm8 = vcmask 261120   ;;  %v103_v40 = vsel %vm74_vm2, %v102_v30, %v101_v37 }
   0xd   :  { %v87_v39 = vsel %vm86_vm6, %v85_v25, %v84_v36  ;;  %v105_v41 = vsel %vm77_vm3, %v104_v31, %v103_v40 }
   0xe   :  { %v107_v42 = vsel %vm80_vm4, %v106_v33, %v105_v41  ;;  %v2106_v43 = vsel %vm89_vm7, %v88_v27, %v87_v39 }
   0xf   :  { %v109_v44 = vsel %vm83_vm5, %v108_v34, %v107_v42 }
  0x10   :  { %v111_v45 = vsel %vm86_vm6, %v110_v35, %v109_v44 }
  0x11   :  { %v2111_v46 = vsel %vm89_vm7, %v112_v38, %v111_v45 }
  0x12   :  { %v115_v47 = vpack.c.bf16 %v2111_v46, %v2106_v43 }
  0x13   :  { %18 = vsyncpa [#allocation3], 0  ;;  %v1599_v48 = vld [vmem:[%s2410_s2] ss:$0 sm:$0xff]  ;;  %s1945_s26 = smov 120   ;;  %s1946_s27 = smov 96  }
  0x14   :  { %1695 = vmatmul.mubr.msk.bf16.vlgmr.msra.gmra.mrb[0].mxu0 %vm139_vm8, %v115_v47  ;;  %s1947_s28 = smov 80   ;;  %s1948_s29 = smov 88   ;;  %vm188_vm9 = vcmask 64512   ;;  %vm253_vm10 = vcmask 1043456   ;;  %vm643_vm11 = vcmask 130048   ;;  %vm645_vm12 = vcmask 195584  }
  0x15   :  { %1700 = vmatprep.mubr.msk.bf16.mxu0 %vm1944_vm0, %v1943_v1  ;;  %s1949_s2 = smov 72   ;;  %s1950_s30 = smov 112   ;;  %vm1508_vm13 = vcmask 253952  }
  0x16   :  { %s1951_s14 = smov 104   ;;  %s1952_s15 = smov 56  }
  0x17   :  { %s1953_s16 = smov 64   ;;  %s1954_s17 = smov 48  }
  0x18   :  { %s1955_s1 = smov 40   ;;  %s1956_s20 = smov 8  }
  0x19   :  { %s1957_s23 = smov 16   ;;  %s1958_s24 = smov 24  }
  0xe7   :  { %v177_v49 = vpop.f32.mrb[0].mxu0 }
  0xe8   :  { %v178_v50 = vadd.f32 %v1599_v48, %v177_v49  ;;  %v1696_v51 = vpop.f32.mrb[1].mxu0 }
  0xe9   :  { %v180_v52 = vpop.f32.mrb[2].mxu0 }
  0xea   :  { %v2121_v53 = vpack.c.bf16 %v178_v50, %v178_v50  ;;  %v1697_v54 = vpop.f32.mrb[3].mxu0  ;;  %v181_v55 = vadd.f32 %v1599_v48, %v180_v52 }
  0xec   :  { %297 = vrot.lane.b32.xlu1 %v2121_v53, %s1945_s26  ;;  %186 = vrot.lane.b32.xlu0 %v2121_v53, %s1946_s27  ;;  %v2129_v56 = vpack.c.bf16 %v181_v55, %v181_v55 }
  0xf0   :  { %410 = vrot.lane.b32.xlu1 %v2121_v53, %s1947_s28  ;;  %299 = vrot.lane.b32.xlu0 %v2121_v53, %s1948_s29 }
  0xf4   :  { %521 = vrot.lane.b32.xlu1 %v2121_v53, %s1949_s2  ;;  %408 = vrot.lane.b32.xlu0 %v2121_v53, %s1950_s30 }
  0xf8   :  { %519 = vrot.lane.b32.xlu0 %v2121_v53, %s1951_s14  ;;  %649 = vrot.lane.b32.xlu1 %v2129_v56, %s1946_s27 }
  0xfc   :  { %760 = vrot.lane.b32.xlu0 %v2129_v56, %s1948_s29  ;;  %758 = vrot.lane.b32.xlu1 %v2129_v56, %s1945_s26 }
 0x100   :  { %871 = vrot.lane.b32.xlu0 %v2129_v56, %s1947_s28  ;;  %869 = vrot.lane.b32.xlu1 %v2129_v56, %s1950_s30 }
 0x104   :  { %982 = vrot.lane.b32.xlu0 %v2129_v56, %s1949_s2  ;;  %980 = vrot.lane.b32.xlu1 %v2129_v56, %s1951_s14 }
 0x15e   :  { %v187_v57 = vpop.permute.xlu0 %186  ;;  %v298_v59 = vpop.permute.xlu1 %297 }
 0x15f   :  { %v193_v58 = vsel %vm188_vm9, %v187_v57, 0 }
 0x160   :  { %1699 = vmatpush3.bf16.xpose.msra.mxu0 %v193_v58 }
 0x161   :  { %1704 = vmatprep.subr.bf16.mxu0 %v1943_v1 }
 0x162   :  { %v300_v60 = vpop.permute.xlu0 %299  ;;  %v411_v62 = vpop.permute.xlu1 %410 }
 0x163   :  { %v305_v61 = vsel %vm188_vm9, %v300_v60, 0  ;;  %v416_v63 = vsel %vm188_vm9, %v411_v62, 0 }
 0x164   :  { %1711 = vmatpush3.bf16.xpose.msra.mxu1 %v305_v61 }
 0x165   :  { %1722 = vmatprep.subr.bf16.mxu1 %v1943_v1 }
 0x166   :  { %v522_v0 = vpop.permute.xlu1 %521  ;;  %v409_v2 = vpop.permute.xlu0 %408 }
 0x167   :  { %1701 = vmatmul.mubr.msk.bf16.vlgmr.msra.gmra.mrb[4].mxu0 %vm188_vm9, %v2121_v53  ;;  %v527_v3 = vsel %vm188_vm9, %v522_v0, 0 }
 0x168   :  { %1706 = vmatprep.mubr.msk.bf16.mxu0 %vm1944_vm0, %v1943_v1 }
 0x16a   :  { %v650_v4 = vpop.permute.xlu1 %649  ;;  %v520_v5 = vpop.permute.xlu0 %519 }
 0x16b   :  { %1713 = vmatmul.mubr.msk.bf16.vlgmr.msra.gmra.mrb[0].mxu1 %vm188_vm9, %v298_v59  ;;  %v655_v6 = vsel %vm188_vm9, %v650_v4, 0 }
 0x16c   :  { %1723 = vmatpush3.bf16.xpose.msra.mxu1 %v416_v63  ;;  %1724 = vmatprep.mubr.msk.bf16.mxu1 %vm1944_vm0, %v1943_v1 }
 0x16d   :  { %1734 = vmatprep.subr.bf16.mxu1 %v1943_v1 }
 0x16e   :  { %v761_v7 = vpop.permute.xlu0 %760  ;;  %v759_v10 = vpop.permute.xlu1 %758 }
 0x16f   :  { %v766_v8 = vsel %vm188_vm9, %v761_v7, 0 }
 0x172   :  { %v872_v9 = vpop.permute.xlu0 %871  ;;  %v870_v13 = vpop.permute.xlu1 %869 }
 0x173   :  { %1725 = vmatmul.mubr.msk.bf16.vlgmr.msra.gmra.mrb[4].mxu1 %vm188_vm9, %v409_v2  ;;  %v877_v11 = vsel %vm188_vm9, %v872_v9, 0 }
 0x174   :  { %1735 = vmatpush3.bf16.xpose.msra.mxu1 %v527_v3  ;;  %1736 = vmatprep.mubr.msk.bf16.mxu1 %vm1944_vm0, %v1943_v1 }
 0x175   :  { %1746 = vmatprep.subr.bf16.mxu1 %v1943_v1 }
 0x176   :  { %v983_v12 = vpop.permute.xlu0 %982  ;;  %v981_v15 = vpop.permute.xlu1 %980 }
 0x177   :  { %v988_v14 = vsel %vm188_vm9, %v983_v12, 0 }
 0x17b   :  { %1737 = vmatmul.mubr.msk.bf16.vlgmr.msra.gmra.mrb[8].mxu1 %vm188_vm9, %v520_v5 }
 0x17c   :  { %1747 = vmatpush3.bf16.xpose.msra.mxu1 %v655_v6  ;;  %1748 = vmatprep.mubr.msk.bf16.mxu1 %vm1944_vm0, %v1943_v1 }
 0x17d   :  { %1758 = vmatprep.subr.bf16.mxu1 %v1943_v1 }
 0x183   :  { %1749 = vmatmul.mubr.msk.bf16.vlgmr.msra.gmra.mrb[12].mxu1 %vm188_vm9, %v2129_v56 }
 0x184   :  { %1759 = vmatpush3.bf16.xpose.msra.mxu1 %v766_v8  ;;  %1760 = vmatprep.mubr.msk.bf16.mxu1 %vm1944_vm0, %v1943_v1 }
 0x185   :  { %1770 = vmatprep.subr.bf16.mxu1 %v1943_v1 }
 0x18b   :  { %1761 = vmatmul.mubr.msk.bf16.vlgmr.msra.gmra.mrb[16].mxu1 %vm188_vm9, %v759_v10 }
 0x18c   :  { %1771 = vmatpush3.bf16.xpose.msra.mxu1 %v877_v11  ;;  %1772 = vmatprep.mubr.msk.bf16.mxu1 %vm1944_vm0, %v1943_v1 }
 0x18d   :  { %1782 = vmatprep.subr.bf16.mxu1 %v1943_v1 }
 0x193   :  { %1773 = vmatmul.mubr.msk.bf16.vlgmr.msra.gmra.mrb[20].mxu1 %vm188_vm9, %v870_v13 }
 0x194   :  { %1783 = vmatpush3.bf16.xpose.msra.mxu1 %v988_v14  ;;  %1784 = vmatprep.mubr.msk.bf16.mxu1 %vm1944_vm0, %v1943_v1 }
 0x195   :  { %1794 = vmatprep.subr.bf16.mxu1 %v1943_v1 }
 0x19b   :  { %1785 = vmatmul.mubr.msk.bf16.vlgmr.msra.gmra.mrb[24].mxu1 %vm188_vm9, %v981_v15 }
 0x19c   :  { %1798 = vmatprep.mubr.msk.bf16.mxu1 %vm1944_vm0, %v1943_v1 }
 0x23a   :  { %v229_v16 = vpop.f32.mrb[4].mxu0 }
 0x23b   :  { %v235_v17 = vmul.f32 0.35355338, %v229_v16  ;;  %v1702_v18 = vpop.f32.mrb[5].mxu0 }
 0x23c   :  { %v232_v19 = vpop.f32.mrb[6].mxu0 }
 0x23d   :  { %v1703_v20 = vpop.f32.mrb[7].mxu0  ;;  %v236_v21 = vsel %vm188_vm9, %v235_v17, -inf }
 0x23e   :  { %v341_v22 = vpop.f32.mrb[0].mxu1  ;;  %237 = vmax.xlane.f32.xlu0 %v236_v21 }
 0x23f   :  { %v347_v23 = vmul.f32 0.35355338, %v341_v22  ;;  %v1714_v24 = vpop.f32.mrb[1].mxu1 }
 0x240   :  { %v344_v25 = vpop.f32.mrb[2].mxu1 }
 0x241   :  { %v1715_v26 = vpop.f32.mrb[3].mxu1  ;;  %v348_v27 = vsel %vm188_vm9, %v347_v23, -inf }
 0x242   :  { %349 = vmax.xlane.f32.xlu1 %v348_v27 }
 0x246   :  { %v452_v28 = vpop.f32.mrb[4].mxu1 }
 0x247   :  { %v458_v29 = vmul.f32 0.35355338, %v452_v28  ;;  %v1726_v30 = vpop.f32.mrb[5].mxu1 }
 0x248   :  { %v455_v31 = vpop.f32.mrb[6].mxu1 }
 0x249   :  { %v1727_v32 = vpop.f32.mrb[7].mxu1  ;;  %v459_v33 = vsel %vm188_vm9, %v458_v29, -inf }
 0x24a   :  { %460 = vmax.xlane.f32.xlu0 %v459_v33 }
 0x24e   :  { %v563_v34 = vpop.f32.mrb[8].mxu1 }
 0x24f   :  { %v2184_v35 = vmul.f32 0.35355338, %v563_v34  ;;  %v1738_v36 = vpop.f32.mrb[9].mxu1 }
 0x250   :  { %v566_v37 = vpop.f32.mrb[10].mxu1 }
 0x251   :  { %v1739_v38 = vpop.f32.mrb[11].mxu1  ;;  %v570_v39 = vsel %vm188_vm9, %v2184_v35, -inf }
 0x252   :  { %571 = vmax.xlane.f32.xlu0 %v570_v39 }
 0x256   :  { %v691_v40 = vpop.f32.mrb[12].mxu1 }
 0x257   :  { %v2188_v41 = vmul.f32 0.35355338, %v691_v40  ;;  %v1750_v42 = vpop.f32.mrb[13].mxu1 }
 0x258   :  { %v694_v44 = vpop.f32.mrb[14].mxu1 }
 0x259   :  { %v1751_v45 = vpop.f32.mrb[15].mxu1  ;;  %v698_v47 = vsel %vm188_vm9, %v2188_v41, -inf }
 0x25a   :  { %699 = vmax.xlane.f32.xlu1 %v698_v47 }
 0x25e   :  { %v802_v48 = vpop.f32.mrb[16].mxu1 }
 0x25f   :  { %v2192_v49 = vmul.f32 0.35355338, %v802_v48  ;;  %v1762_v50 = vpop.f32.mrb[17].mxu1 }
 0x260   :  { %v805_v51 = vpop.f32.mrb[18].mxu1 }
 0x261   :  { %v1763_v52 = vpop.f32.mrb[19].mxu1  ;;  %v809_v54 = vsel %vm188_vm9, %v2192_v49, -inf }
 0x262   :  { %810 = vmax.xlane.f32.xlu0 %v809_v54 }
 0x266   :  { %v913_v55 = vpop.f32.mrb[20].mxu1 }
 0x267   :  { %v919_v57 = vmul.f32 0.35355338, %v913_v55  ;;  %v1774_v58 = vpop.f32.mrb[21].mxu1 }
 0x268   :  { %v916_v59 = vpop.f32.mrb[22].mxu1 }
 0x269   :  { %v1775_v60 = vpop.f32.mrb[23].mxu1  ;;  %v920_v61 = vsel %vm188_vm9, %v919_v57, -inf }
 0x26a   :  { %921 = vmax.xlane.f32.xlu1 %v920_v61 }
 0x26e   :  { %v1024_v62 = vpop.f32.mrb[24].mxu1 }
 0x26f   :  { %v1786_v63 = vpop.f32.mrb[25].mxu1  ;;  %v2201_v3 = vmul.f32 0.35355338, %v1024_v62 }
 0x270   :  { %v1027_v0 = vpop.f32.mrb[26].mxu1 }
 0x271   :  { %v1787_v2 = vpop.f32.mrb[27].mxu1  ;;  %v1031_v4 = vsel %vm188_vm9, %v2201_v3, -inf }
 0x278   :  { %360 = vrot.lane.b32.xlu0 %v2121_v53, %s1952_s15 }
 0x27b   :  { %248 = vrot.lane.b32.xlu1 %v2121_v53, %s1953_s16 }
 0x297   :  { %1032 = vmax.xlane.f32.xlu0 %v1031_v4 }
 0x2cb   :  { %v238_v5 = vpop.xlane.xlu0 %237 }
 0x2cc   :  { %v239_v6 = vsub.f32 %v235_v17, %v238_v5 }
 0x2ce   :  { %v240_v7 = vmul.f32 1.442695, %v239_v6 }
 0x2cf   :  { %v350_v8 = vpop.xlane.xlu1 %349 }
 0x2d0   :  { %1879 = vpow2.f32 %v240_v7  ;;  %v351_v9 = vsub.f32 %v347_v23, %v350_v8 }
 0x2d2   :  { %v352_v10 = vmul.f32 1.442695, %v351_v9 }
 0x2d4   :  { %1881 = vpow2.f32 %v352_v10 }
 0x2d7   :  { %v461_v11 = vpop.xlane.xlu0 %460 }
 0x2d8   :  { %v462_v12 = vsub.f32 %v458_v29, %v461_v11 }
 0x2da   :  { %v2205_v13 = vpop.eup %1879  ;;  %v463_v14 = vmul.f32 1.442695, %v462_v12 }
 0x2db   :  { %v242_v15 = vsel %vm188_vm9, %v2205_v13, 0.0 }
 0x2dc   :  { %1883 = vpow2.f32 %v463_v14  ;;  %243 = vadd.xlane.f32.xlu1 %v242_v15 }
 0x2de   :  { %v2209_v16 = vpop.eup %1881 }
 0x2df   :  { %v354_v17 = vsel %vm188_vm9, %v2209_v16, 0.0  ;;  %v572_v23 = vpop.xlane.xlu0 %571 }
 0x2e0   :  { %355 = vadd.xlane.f32.xlu0 %v354_v17  ;;  %v573_v25 = vsub.f32 %v2184_v35, %v572_v23 }
 0x2e2   :  { %v574_v26 = vmul.f32 1.442695, %v573_v25 }
 0x2e4   :  { %1885 = vpow2.f32 %v574_v26 }
 0x2e6   :  { %v2213_v18 = vpop.eup %1883 }
 0x2e7   :  { %v465_v19 = vsel %vm188_vm9, %v2213_v18, 0.0  ;;  %v700_v20 = vpop.xlane.xlu1 %699 }
 0x2e8   :  { %466 = vadd.xlane.f32.xlu1 %v465_v19  ;;  %v701_v27 = vsub.f32 %v2188_v41, %v700_v20 }
 0x2ea   :  { %v702_v30 = vmul.f32 1.442695, %v701_v27 }
 0x2ec   :  { %1887 = vpow2.f32 %v702_v30 }
 0x2ee   :  { %v1886_v33 = vpop.eup %1885 }
 0x2ef   :  { %v811_v28 = vpop.xlane.xlu0 %810  ;;  %v576_v34 = vsel %vm188_vm9, %v1886_v33, 0.0 }
 0x2f0   :  { %v812_v29 = vsub.f32 %v2192_v49, %v811_v28 }
 0x2f3   :  { %v361_v41 = vpop.permute.xlu0 %360 }
 0x2f4   :  { %v366_v58 = vsel %vm253_vm10, %v361_v41, 0 }
 0x2f6   :  { %471 = vrot.lane.b32.xlu0 %v2121_v53, %s1954_s17  ;;  %v2227_v36 = vpop.eup %1887 }
 0x2f7   :  { %v922_v21 = vpop.xlane.xlu1 %921  ;;  %v704_v37 = vsel %vm188_vm9, %v2227_v36, 0.0 }
 0x2f8   :  { %v923_v31 = vsub.f32 %v919_v57, %v922_v21 }
 0x2f9   :  { %582 = vrot.lane.b32.xlu1 %v2121_v53, %s1955_s1  ;;  %v813_v53 = vmul.f32 1.442695, %v812_v29 }
 0x2fa   :  { %v924_v32 = vmul.f32 1.442695, %v923_v31 }
 0x2fb   :  { %v249_v22 = vpop.permute.xlu1 %248  ;;  %1889 = vpow2.f32 %v813_v53 }
 0x2fc   :  { %v255_v24 = vsel %vm253_vm10, %v249_v22, 0  ;;  %1891 = vpow2.f32 %v924_v32 }
 0x2fd   :  { %1705 = vmatpush3.bf16.msra.mxu0 %v255_v24 }
 0x2fe   :  { %1716 = vmatprep.subr.bf16.mxu0 %v1943_v1 }
 0x305   :  { %v2229_v35 = vpop.eup %1889 }
 0x306   :  { %v2233_v38 = vpop.eup %1891  ;;  %v815_v40 = vsel %vm188_vm9, %v2229_v35, 0.0 }
 0x307   :  { %v926_v39 = vsel %vm188_vm9, %v2233_v38, 0.0 }
 0x315   :  { %577 = vadd.xlane.f32.xlu0 %v576_v34 }
 0x319   :  { %705 = vadd.xlane.f32.xlu0 %v704_v37 }
 0x31d   :  { %927 = vadd.xlane.f32.xlu0 %v926_v39  ;;  %816 = vadd.xlane.f32.xlu1 %v815_v40 }
 0x324   :  { %v1033_v42 = vpop.xlane.xlu0 %1032 }
 0x325   :  { %v1034_v44 = vsub.f32 %v2201_v3, %v1033_v42 }
 0x327   :  { %v1035_v45 = vmul.f32 1.442695, %v1034_v44 }
 0x329   :  { %1893 = vpow2.f32 %v1035_v45 }
 0x32e   :  { %821 = vrot.lane.b32.xlu1 %v2129_v56, %s1952_s15 }
 0x332   :  { %932 = vrot.lane.b32.xlu1 %v2129_v56, %s1954_s17 }
 0x333   :  { %v2244_v47 = vpop.eup %1893 }
 0x334   :  { %v1037_v48 = vsel %vm188_vm9, %v2244_v47, 0.0 }
 0x335   :  { %1038 = vadd.xlane.f32.xlu0 %v1037_v48 }
 0x336   :  { %1043 = vrot.lane.b32.xlu1 %v2129_v56, %s1955_s1 }
 0x34b   :  { %710 = vrot.lane.b32.xlu0 %v2129_v56, %s1953_s16 }
 0x369   :  { %v244_v49 = vpop.xlane.xlu1 %243 }
 0x36a   :  { %1895 = vrcp.f32 %v244_v49 }
 0x36d   :  { %v356_v50 = vpop.xlane.xlu0 %355 }
 0x36e   :  { %1897 = vrcp.f32 %v356_v50 }
 0x371   :  { %v472_v59 = vpop.permute.xlu0 %471 }
 0x372   :  { %v477_v62 = vsel %vm253_vm10, %v472_v59, 0 }
 0x374   :  { %v1896_v51 = vpop.eup %1895 }
 0x375   :  { %v246_v52 = vmul.f32 %v1896_v51, %v2205_v13  ;;  %v467_v54 = vpop.xlane.xlu1 %466 }
 0x376   :  { %1899 = vrcp.f32 %v467_v54 }
 0x377   :  { %v247_v55 = vpack.c.bf16 %v246_v52, %v246_v52 }
 0x378   :  { %v1898_v57 = vpop.eup %1897 }
 0x379   :  { %1707 = vmatmul.mubr.msk.bf16.vlgmr.msra.gmra.mrb[8].mxu0 %vm188_vm9, %v247_v55  ;;  %v358_v56 = vmul.f32 %v1898_v57, %v2209_v16  ;;  %v583_v0 = vpop.permute.xlu1 %582  ;;  %v1867_v55 = vld [vmem:[%s2411_s3] sm:$0xff]  }
 0x37a   :  { %1717 = vmatpush3.bf16.msra.mxu0 %v366_v58  ;;  %1718 = vmatprep.mubr.msk.bf16.mxu0 %vm1944_vm0, %v1943_v1  ;;  %v588_v3 = vsel %vm253_vm10, %v583_v0, 0 }
 0x37b   :  { %1728 = vmatprep.subr.bf16.mxu0 %v1943_v1  ;;  %v359_v60 = vpack.c.bf16 %v358_v56, %v358_v56  ;;  %1795 = vmatpush3.bf16.msra.mxu1 %v1867_v55 }
 0x37c   :  { %1796 = vmatprep.subr.bf16.mxu1 %v1943_v1 }
 0x380   :  { %v1900_v61 = vpop.eup %1899 }
 0x381   :  { %1719 = vmatmul.mubr.msk.bf16.vlgmr.msra.gmra.mrb[12].mxu0 %vm188_vm9, %v359_v60  ;;  %v469_v63 = vmul.f32 %v1900_v61, %v2213_v18  ;;  %v1868_v60 = vld [vmem:[%s2411_s3 + $0x8] sm:$0xff]  }
 0x382   :  { %1729 = vmatpush3.bf16.msra.mxu0 %v477_v62  ;;  %1730 = vmatprep.mubr.msk.bf16.mxu0 %vm1944_vm0, %v1943_v1 }
 0x383   :  { %1740 = vmatprep.subr.bf16.mxu0 %v1943_v1  ;;  %v470_v2 = vpack.c.bf16 %v469_v63, %v469_v63  ;;  %1797 = vmatpush3.bf16.msra.mxu1 %v1868_v60  ;;  %v1623_v60 = vld [vmem:[%s2417_s9] ss:$0 sm:$0xff] }
 0x384   :  { %1810 = vmatprep.subr.bf16.mxu1 %v1943_v1 }
 0x389   :  { %1731 = vmatmul.mubr.msk.bf16.vlgmr.msra.gmra.mrb[16].mxu0 %vm188_vm9, %v470_v2 }
 0x38a   :  { %1741 = vmatpush3.bf16.msra.mxu0 %v588_v3  ;;  %1742 = vmatprep.mubr.msk.bf16.mxu0 %vm1944_vm0, %v1943_v1 }
 0x38b   :  { %1752 = vmatprep.subr.bf16.mxu0 %v1943_v1 }
 0x3a2   :  { %v578_v4 = vpop.xlane.xlu0 %577 }
 0x3a3   :  { %1901 = vrcp.f32 %v578_v4 }
 0x3a6   :  { %v706_v8 = vpop.xlane.xlu0 %705 }
 0x3a7   :  { %1903 = vrcp.f32 %v706_v8 }
 0x3aa   :  { %v817_v9 = vpop.xlane.xlu1 %816  ;;  %v928_v10 = vpop.xlane.xlu0 %927 }
 0x3ab   :  { %1905 = vrcp.f32 %v817_v9 }
 0x3ac   :  { %1907 = vrcp.f32 %v928_v10 }
 0x3ad   :  { %v1902_v5 = vpop.eup %1901 }
 0x3ae   :  { %v580_v6 = vmul.f32 %v1902_v5, %v1886_v33  ;;  %v822_v16 = vpop.permute.xlu1 %821 }
 0x3af   :  { %v827_v19 = vsel %vm253_vm10, %v822_v16, 0 }
 0x3b0   :  { %v581_v7 = vpack.c.bf16 %v580_v6, %v580_v6 }
 0x3b1   :  { %v1904_v11 = vpop.eup %1903 }
 0x3b2   :  { %1743 = vmatmul.mubr.msk.bf16.vlgmr.msra.gmra.mrb[20].mxu0 %vm188_vm9, %v581_v7  ;;  %v708_v13 = vmul.f32 %v1904_v11, %v2227_v36  ;;  %v933_v21 = vpop.permute.xlu1 %932 }
 0x3b3   :  { %1754 = vmatprep.mubr.msk.bf16.mxu0 %vm1944_vm0, %v1943_v1  ;;  %v938_v24 = vsel %vm253_vm10, %v933_v21, 0 }
 0x3b4   :  { %v709_v17 = vpack.c.bf16 %v708_v13, %v708_v13 }
 0x3b5   :  { %v1906_v18 = vpop.eup %1905 }
 0x3b6   :  { %v819_v20 = vmul.f32 %v1906_v18, %v2229_v35  ;;  %v1908_v23 = vpop.eup %1907  ;;  %v1044_v26 = vpop.permute.xlu1 %1043 }
 0x3b7   :  { %v930_v25 = vmul.f32 %v1908_v23, %v2233_v38  ;;  %v1049_v29 = vsel %vm253_vm10, %v1044_v26, 0 }
 0x3b8   :  { %v820_v22 = vpack.c.bf16 %v819_v20, %v819_v20 }
 0x3b9   :  { %v931_v27 = vpack.c.bf16 %v930_v25, %v930_v25 }
 0x3c2   :  { %v1039_v12 = vpop.xlane.xlu0 %1038 }
 0x3c3   :  { %1909 = vrcp.f32 %v1039_v12 }
 0x3c6   :  { %v711_v14 = vpop.permute.xlu0 %710 }
 0x3c7   :  { %v716_v15 = vsel %vm253_vm10, %v711_v14, 0 }
 0x3c8   :  { %1753 = vmatpush3.bf16.msra.mxu0 %v716_v15 }
 0x3c9   :  { %1764 = vmatprep.subr.bf16.mxu0 %v1943_v1 }
 0x3cb   :  { %1755 = vmatmul.mubr.msk.bf16.vlgmr.msra.gmra.mrb[24].mxu0 %vm188_vm9, %v709_v17 }
 0x3cc   :  { %1765 = vmatpush3.bf16.msra.mxu0 %v827_v19  ;;  %1766 = vmatprep.mubr.msk.bf16.mxu0 %vm1944_vm0, %v1943_v1 }
 0x3cd   :  { %1776 = vmatprep.subr.bf16.mxu0 %v1943_v1  ;;  %v1910_v28 = vpop.eup %1909 }
 0x3ce   :  { %v1041_v30 = vmul.f32 %v1910_v28, %v2244_v47 }
 0x3d0   :  { %v1042_v31 = vpack.c.bf16 %v1041_v30, %v1041_v30 }
 0x3d3   :  { %1767 = vmatmul.mubr.msk.bf16.vlgmr.msra.gmra.mrb[28].mxu0 %vm188_vm9, %v820_v22 }
 0x3d4   :  { %1777 = vmatpush3.bf16.msra.mxu0 %v938_v24  ;;  %1778 = vmatprep.mubr.msk.bf16.mxu0 %vm1944_vm0, %v1943_v1  ;;  %v1619_v24 = vld [vmem:[%s2412_s4] ss:$0 sm:$0xff] }
 0x3d5   :  { %1788 = vmatprep.subr.bf16.mxu0 %v1943_v1 }
 0x3db   :  { %1779 = vmatmul.mubr.msk.bf16.vlgmr.msra.gmra.mrb[32].mxu0 %vm188_vm9, %v931_v27 }
 0x3dc   :  { %1789 = vmatpush3.bf16.msra.mxu0 %v1049_v29  ;;  %1790 = vmatprep.mubr.msk.bf16.mxu0 %vm1944_vm0, %v1943_v1 }
 0x3dd   :  { %1802 = vmatprep.subr.bf16.mxu0 %v1943_v1 }
 0x3e3   :  { %1791 = vmatmul.mubr.msk.bf16.vlgmr.msra.gmra.mrb[36].mxu0 %vm188_vm9, %v1042_v31 }
 0x3e4   :  { %1806 = vmatprep.mubr.msk.bf16.mxu0 %vm1944_vm0, %v1943_v1 }
 0x44c   :  { %v291_v53 = vpop.f32.mrb[8].mxu0 }
 0x44d   :  { %v1708_v32 = vpop.f32.mrb[9].mxu0 }
 0x44e   :  { %v294_v33 = vpop.f32.mrb[10].mxu0 }
 0x44f   :  { %v1709_v34 = vpop.f32.mrb[11].mxu0 }
 0x454   :  { %v402_v36 = vpop.f32.mrb[12].mxu0 }
 0x455   :  { %v1720_v35 = vpop.f32.mrb[13].mxu0 }
 0x456   :  { %v405_v37 = vpop.f32.mrb[14].mxu0 }
 0x457   :  { %v1721_v38 = vpop.f32.mrb[15].mxu0 }
 0x45c   :  { %v513_v39 = vpop.f32.mrb[16].mxu0 }
 0x45d   :  { %v1732_v40 = vpop.f32.mrb[17].mxu0 }
 0x45e   :  { %v516_v41 = vpop.f32.mrb[18].mxu0 }
 0x45f   :  { %v1733_v42 = vpop.f32.mrb[19].mxu0 }
 0x485   :  { %v624_v44 = vpop.f32.mrb[20].mxu0 }
 0x486   :  { %v1744_v45 = vpop.f32.mrb[21].mxu0 }
 0x487   :  { %v627_v47 = vpop.f32.mrb[22].mxu0  ;;  %v1871_v45 = vld [vmem:[%s2415_s7] sm:$0xff]  }
 0x488   :  { %v1745_v48 = vpop.f32.mrb[23].mxu0  ;;  %v1872_v47 = vld [vmem:[%s2415_s7 + $0x8] sm:$0xff]  }
 0x489   :  { %v1873_v48 = vld [vmem:[%s2415_s7 + $0x10] sm:$0xff]  }
 0x49e   :  { %v752_v49 = vpop.f32.mrb[24].mxu0 }
 0x49f   :  { %v1756_v50 = vpop.f32.mrb[25].mxu0 }
 0x4a0   :  { %v755_v51 = vpop.f32.mrb[26].mxu0  ;;  %v1875_v50 = vld [vmem:[%s2415_s7 + $0x20] sm:$0xff]  }
 0x4a1   :  { %v1757_v52 = vpop.f32.mrb[27].mxu0  ;;  %v1876_v51 = vld [vmem:[%s2415_s7 + $0x28] sm:$0xff]  }
 0x4a6   :  { %v863_v54 = vpop.f32.mrb[28].mxu0 }
 0x4a7   :  { %v1850_v57 = vpack.i.bf16 %v863_v54, %v402_v36  ;;  %v1768_v58 = vpop.f32.mrb[29].mxu0 }
 0x4a8   :  { %v866_v56 = vpop.f32.mrb[30].mxu0 }
 0x4a9   :  { %1851 = vrot.lane.b32.xlu1 %v1850_v57, %s1956_s20  ;;  %v1769_v59 = vpop.f32.mrb[31].mxu0 }
 0x4ae   :  { %v974_v61 = vpop.f32.mrb[32].mxu0 }
 0x4af   :  { %v1855_v62 = vpack.i.bf16 %v974_v61, %v513_v39  ;;  %v1780_v63 = vpop.f32.mrb[33].mxu0 }
 0x4b0   :  { %v977_v0 = vpop.f32.mrb[34].mxu0 }
 0x4b1   :  { %1856 = vrot.lane.b32.xlu1 %v1855_v62, %s1957_s23  ;;  %v1781_v2 = vpop.f32.mrb[35].mxu0 }
 0x4b2   :  { %v1624_v2 = vld [vmem:[%s2418_s10] ss:$0 sm:$0xff] }
 0x4b6   :  { %v1085_v3 = vpop.f32.mrb[36].mxu0 }
 0x4b7   :  { %v1860_v4 = vpack.i.bf16 %v1085_v3, %v624_v44  ;;  %v1792_v5 = vpop.f32.mrb[37].mxu0  ;;  %v1870_v44 = vld [vmem:[%s2413_s5 + $0x8] sm:$0xff]  }
 0x4b8   :  { %v1088_v6 = vpop.f32.mrb[38].mxu0 }
 0x4b9   :  { %1861 = vrot.lane.b32.xlu0 %v1860_v4, %s1958_s24  ;;  %v1793_v7 = vpop.f32.mrb[39].mxu0 }
 0x4ba   :  { %v1877_v7 = vld [vmem:[%s2415_s7 + $0x30] sm:$0xff]  }
 0x51b   :  { %v1852_v8 = vpop.permute.xlu1 %1851 }
 0x51c   :  { %v1854_v10 = vunpack.i.h.bf16 %v1852_v8  ;;  %v1853_v11 = vunpack.i.l.bf16 %v1852_v8  ;;  %v1878_v8 = vld [vmem:[%s2415_s7 + $0x38] sm:$0xff]  }
 0x51e   :  { %v1103_v15 = vsel %vm188_vm9, %v752_v49, %v1854_v10  ;;  %v642_v16 = vsel %vm188_vm9, %v291_v53, %v1853_v11  ;;  %v1874_v49 = vld [vmem:[%s2415_s7 + $0x18] sm:$0xff]  }
 0x523   :  { %v1857_v9 = vpop.permute.xlu1 %1856 }
 0x524   :  { %v1859_v12 = vunpack.i.h.bf16 %v1857_v9  ;;  %v1858_v13 = vunpack.i.l.bf16 %v1857_v9  ;;  %v1625_v9 = vld [vmem:[%s2414_s6] ss:$0 sm:$0xff] }
 0x526   :  { %v1104_v19 = vsel %vm643_vm11, %v1103_v15, %v1859_v12  ;;  %v644_v20 = vsel %vm643_vm11, %v642_v16, %v1858_v13 }
 0x52b   :  { %v1862_v14 = vpop.permute.xlu0 %1861 }
 0x52c   :  { %v1864_v17 = vunpack.i.h.bf16 %v1862_v14  ;;  %v1863_v18 = vunpack.i.l.bf16 %v1862_v14 }
 0x52e   :  { %v1105_v21 = vsel %vm645_vm12, %v1104_v19, %v1864_v17  ;;  %v646_v22 = vsel %vm645_vm12, %v644_v20, %v1863_v18 }
 0x52f   :  { %v1106_v23 = vpack.c.bf16 %v1105_v21, %v646_v22 }
 0x531   :  { %1799 = vmatmul.mubr.msk.bf16.vlgmr.msra.gmra.mrb[28].mxu1 %vm139_vm8, %v1106_v23 }
 0x532   :  { %1826 = vmatprep.mubr.msk.bf16.mxu1 %vm1944_vm0, %v1943_v1  ;;  %1811 = vmatpush3.bf16.msra.mxu1 %v1871_v45  ;;  %v1455_v45 = vlaneseq }
 0x533   :  { %1812 = vmatprep.subr.bf16.mxu1 %v1943_v1 }
 0x536   :  { %1813 = vmatpush3.bf16.msra.mxu1 %v1872_v47 }
 0x537   :  { %1814 = vmatprep.subr.bf16.mxu1 %v1943_v1 }
 0x53a   :  { %1815 = vmatpush3.bf16.msra.mxu1 %v1873_v48  ;;  %v1456_v48 = vshrl.u32 %v1455_v45, 7 }
 0x53b   :  { %1816 = vmatprep.subr.bf16.mxu1 %v1943_v1 }
 0x53e   :  { %1817 = vmatpush3.bf16.msra.mxu1 %v1874_v49 }
 0x53f   :  { %1818 = vmatprep.subr.bf16.mxu1 %v1943_v1 }
 0x542   :  { %1819 = vmatpush3.bf16.msra.mxu1 %v1875_v50  ;;  %v1638_v50 = vld [vmem:[%s2419_s11] ss:$0 sm:$0xff]  ;;  %s1960_s11 = smov [#allocation2]  }
 0x543   :  { %1820 = vmatprep.subr.bf16.mxu1 %v1943_v1 }
 0x546   :  { %1821 = vmatpush3.bf16.msra.mxu1 %v1876_v51 }
 0x547   :  { %1822 = vmatprep.subr.bf16.mxu1 %v1943_v1 }
 0x54a   :  { %1823 = vmatpush3.bf16.msra.mxu1 %v1877_v7 }
 0x54b   :  { %1824 = vmatprep.subr.bf16.mxu1 %v1943_v1 }
 0x54e   :  { %1825 = vmatpush3.bf16.msra.mxu1 %v1878_v8 }
 0x604   :  { %v1167_v25 = vpop.f32.mrb[28].mxu1 }
 0x605   :  { %v1168_v26 = vadd.f32 %v1619_v24, %v1167_v25  ;;  %v1800_v27 = vpop.f32.mrb[29].mxu1 }
 0x606   :  { %v1170_v28 = vpop.f32.mrb[30].mxu1 }
 0x607   :  { %v1171_v29 = vadd.f32 %v1619_v24, %v1170_v28  ;;  %v1801_v30 = vpop.f32.mrb[31].mxu1  ;;  %v1174_v31 = vadd.f32 %v1168_v26, %v2106_v43 }
 0x609   :  { %v1178_v53 = vsel %vm139_vm8, %v1174_v31, 0.0  ;;  %v1175_v32 = vadd.f32 %v1171_v29, %v2111_v46  ;;  %v1869_v46 = vld [vmem:[%s2413_s5] sm:$0xff]  }
 0x60a   :  { %1179 = vadd.xlane.f32.xlu1 %v1178_v53  ;;  %1803 = vmatpush3.bf16.msra.mxu0 %v1869_v46  ;;  %v1959_v46 = vmov 1966171168  }
 0x60b   :  { %v1181_v33 = vsel %vm139_vm8, %v1175_v32, 0.0  ;;  %1804 = vmatprep.subr.bf16.mxu0 %v1943_v1  ;;  %v1629_v1 = vld [vmem:[%s2416_s8] ss:$0 sm:$0xff] }
 0x60c   :  { %1182 = vadd.xlane.f32.xlu0 %v1181_v33 }
 0x60e   :  { %1805 = vmatpush3.bf16.msra.mxu0 %v1870_v44  ;;  %v1453_v44 = vunpack.c.l.s4 %v1959_v46 }
 0x610   :  { %v1454_v47 = vunpack.c.0.s8 %v1453_v44 }
 0x697   :  { %v1180_v34 = vpop.xlane.xlu1 %1179 }
 0x698   :  { %v1185_v36 = vmul.f32 0.03125, %v1180_v34 }
 0x699   :  { %v1183_v35 = vpop.xlane.xlu0 %1182 }
 0x69a   :  { %v1187_v37 = vsub.f32 %v1174_v31, %v1185_v36  ;;  %v1186_v38 = vmul.f32 0.03125, %v1183_v35 }
 0x69c   :  { %v1188_v39 = vsub.f32 %v1175_v32, %v1186_v38  ;;  %v1189_v40 = vmul.f32 %v1187_v37, %v1187_v37 }
 0x69e   :  { %v1191_v41 = vsel %vm139_vm8, %v1189_v40, 0.0  ;;  %v1190_v42 = vmul.f32 %v1188_v39, %v1188_v39 }
 0x69f   :  { %1192 = vadd.xlane.f32.xlu0 %v1191_v41 }
 0x6a0   :  { %v1194_v43 = vsel %vm139_vm8, %v1190_v42, 0.0 }
 0x6a1   :  { %1195 = vadd.xlane.f32.xlu1 %v1194_v43 }
 0x72c   :  { %v1193_v52 = vpop.xlane.xlu0 %1192 }
 0x72d   :  { %v1197_v54 = vmul.f32 0.03125, %v1193_v52 }
 0x72e   :  { %v1196_v55 = vpop.xlane.xlu1 %1195 }
 0x72f   :  { %v1199_v57 = vadd.f32 1e-05, %v1197_v54  ;;  %v1198_v58 = vmul.f32 0.03125, %v1196_v55  ;;  %v1639_v54 = vld [vmem:[%s2420_s12] ss:$0 sm:$0xff]  ;;  %v1457_v55 = vsub.s32 %v1454_v47, %v1456_v48  ;;  %s1588_s12 = sshll.u32 %s1960_s11, 4  ;;  %s1589_s12 = int_to_ptr.vmem [resolvable:$true] %s1588_s12 }
 0x730   :  { %s1919_s28 = scalar_lea.vmem %s1589_s12, 256  ;;  %p1924_p1 = scmp.lt.s32.totalorder %s1589_s12, %s1589_s12 }
 0x731   :  { %1911 = vrsqrt.f32 %v1199_v57  ;;  %v1200_v56 = vadd.f32 1e-05, %v1198_v58  ;;  %p1920_p0 = scmp.ne.s32.totalorder %s1589_s12, %s1919_s28  ;;  %p1925_p2 = scmp.lt.s32.totalorder %s1919_s28, %s1919_s28 }
 0x733   :  { %1913 = vrsqrt.f32 %v1200_v56  ;;  %p1926_p3 = por %p1925_p2, %p1924_p1 }
 0x735   :  { %p1927_p4 = pnand %p1926_p3, %p1920_p0 }
 0x73b   :  { %v1912_v59 = vpop.eup %1911 }
 0x73c   :  { %v1203_v61 = vmul.f32 %v1912_v59, %v1187_v37 }
 0x73d   :  { %v1914_v62 = vpop.eup %1913 }
 0x73e   :  { %v1211_v63 = vmul.f32 %v1623_v60, %v1203_v61  ;;  %v1204_v0 = vmul.f32 %v1914_v62, %v1188_v39 }
 0x740   :  { %v1212_v3 = vmul.f32 %v1623_v60, %v1204_v0  ;;  %v1219_v4 = vadd.f32 %v1624_v2, %v1211_v63 }
 0x742   :  { %v1220_v5 = vadd.f32 %v1624_v2, %v1212_v3 }
 0x744   :  { %v1221_v6 = vpack.c.bf16 %v1220_v5, %v1219_v4 }
 0x746   :  { %1807 = vmatmul.mubr.msk.bf16.vlgmr.msra.gmra.mrb[40].mxu0 %vm139_vm8, %v1221_v6 }
 0x819   :  { %v1282_v10 = vpop.f32.mrb[40].mxu0 }
 0x81a   :  { %v1283_v11 = vadd.f32 %v1625_v9, %v1282_v10  ;;  %v1808_v12 = vpop.f32.mrb[41].mxu0 }
 0x81b   :  { %v1285_v13 = vpop.f32.mrb[42].mxu0 }
 0x81c   :  { %v1286_v14 = vadd.f32 %v1625_v9, %v1285_v13  ;;  %v1809_v15 = vpop.f32.mrb[43].mxu0  ;;  %v1289_v16 = vmax.f32 %v1283_v11, 0.0 }
 0x81e   :  { %v1290_v17 = vmax.f32 %v1286_v14, 0.0 }
 0x820   :  { %v1291_v18 = vpack.c.bf16 %v1290_v17, %v1289_v16 }
 0x822   :  { %1827 = vmatmul.mubr.bf16.vlgmr.msra.gmra.mrb[32].mxu1 %v1291_v18 }
 0x8f5   :  { %v1397_v19 = vpop.f32.mrb[32].mxu1 }
 0x8f6   :  { %v1398_v20 = vadd.f32 %v1629_v1, %v1397_v19  ;;  %v1828_v21 = vpop.f32.mrb[33].mxu1 }
 0x8f7   :  { %v1400_v22 = vpop.f32.mrb[34].mxu1 }
 0x8f8   :  { %v1401_v23 = vadd.f32 %v1629_v1, %v1400_v22  ;;  %v1829_v24 = vpop.f32.mrb[35].mxu1  ;;  %v1404_v25 = vadd.f32 %v1398_v20, %v1219_v4 }
 0x8fa   :  { %v1408_v26 = vsel %vm139_vm8, %v1404_v25, 0.0  ;;  %v1405_v27 = vadd.f32 %v1401_v23, %v1220_v5 }
 0x8fb   :  { %1409 = vadd.xlane.f32.xlu0 %v1408_v26 }
 0x8fc   :  { %v1411_v28 = vsel %vm139_vm8, %v1405_v27, 0.0 }
 0x8fd   :  { %1412 = vadd.xlane.f32.xlu1 %v1411_v28 }
 0x988   :  { %v1410_v29 = vpop.xlane.xlu0 %1409 }
 0x989   :  { %v1414_v30 = vmul.f32 0.03125, %v1410_v29 }
 0x98a   :  { %v1413_v31 = vpop.xlane.xlu1 %1412 }
 0x98b   :  { %v1416_v53 = vsub.f32 %v1404_v25, %v1414_v30  ;;  %v1415_v32 = vmul.f32 0.03125, %v1413_v31 }
 0x98d   :  { %v1417_v33 = vsub.f32 %v1405_v27, %v1415_v32  ;;  %v1418_v34 = vmul.f32 %v1416_v53, %v1416_v53 }
 0x98f   :  { %v1420_v36 = vsel %vm139_vm8, %v1418_v34, 0.0  ;;  %v1419_v35 = vmul.f32 %v1417_v33, %v1417_v33 }
 0x990   :  { %1421 = vadd.xlane.f32.xlu0 %v1420_v36 }
 0x991   :  { %v1423_v37 = vsel %vm139_vm8, %v1419_v35, 0.0 }
 0x992   :  { %1424 = vadd.xlane.f32.xlu1 %v1423_v37 }
 0xa1d   :  { %v1422_v38 = vpop.xlane.xlu0 %1421 }
 0xa1e   :  { %v1426_v39 = vmul.f32 0.03125, %v1422_v38 }
 0xa1f   :  { %v1425_v40 = vpop.xlane.xlu1 %1424 }
 0xa20   :  { %v1428_v41 = vadd.f32 1e-05, %v1426_v39  ;;  %v1427_v42 = vmul.f32 0.03125, %v1425_v40 }
 0xa22   :  { %1915 = vrsqrt.f32 %v1428_v41  ;;  %v1429_v43 = vadd.f32 1e-05, %v1427_v42 }
 0xa24   :  { %1917 = vrsqrt.f32 %v1429_v43 }
 0xa2c   :  { %v1916_v49 = vpop.eup %1915 }
 0xa2d   :  { %v1432_v51 = vmul.f32 %v1916_v49, %v1416_v53 }
 0xa2e   :  { %v1918_v52 = vpop.eup %1917 }
 0xa2f   :  { %v1440_v57 = vmul.f32 %v1638_v50, %v1432_v51  ;;  %v1433_v58 = vmul.f32 %v1918_v52, %v1417_v33 }
 0xa31   :  { %v1448_v56 = vadd.f32 %v1639_v54, %v1440_v57  ;;  %v1441_v59 = vmul.f32 %v1638_v50, %v1433_v58 }
 0xa33   :  { %v1451_v60 = vcombine.high %v1448_v56, %v1448_v56  ;;  %v1458_v61 = vrot.slane %v1448_v56, %v1457_v55  ;;  %v1449_v62 = vadd.f32 %v1639_v54, %v1441_v59 }
 0xa35   :  { %v1465_v63 = vrot.slane %v1451_v60, %v1457_v55  ;;  %v1466_v0 = vcombine.high %v1458_v61, %v1458_v61  ;;  %v1474_v2 = vrot.slane %v1458_v61, %v1457_v55  ;;  %v1518_v3 = vcombine.high %v1449_v62, %v1449_v62 }
 0xa36   :  { %v1525_v4 = vrot.slane %v1449_v62, %v1457_v55 }
 0xa37   :  { %v1467_v5 = vcombine.high %v1465_v63, %v1465_v63  ;;  %v1481_v6 = vrot.slane %v1465_v63, %v1457_v55  ;;  %v1488_v7 = vrot.slane %v1466_v0, %v1457_v55  ;;  %v1496_v8 = vcombine.high %v1474_v2, %v1474_v2  ;;  %1509 = vst.msk [vmem:[#allocation2] sm:$0x1] %vm1508_vm13, %v1474_v2 }
 0xa38   :  { %v1532_v9 = vrot.slane %v1518_v3, %v1457_v55  ;;  %v1533_v10 = vcombine.high %v1525_v4, %v1525_v4  ;;  %v1541_v11 = vrot.slane %v1525_v4, %v1457_v55 }
 0xa39   :  { %v1495_v12 = vrot.slane %v1467_v5, %v1457_v55  ;;  %v1497_v13 = vcombine.high %v1481_v6, %v1481_v6  ;;  %v1498_v14 = vcombine.high %v1488_v7, %v1488_v7  ;;  %1510 = vst.msk [vmem:[#allocation2 + $0x2] sm:$0x1] %vm1508_vm13, %v1488_v7  ;;  %1511 = vst.msk [vmem:[#allocation2 + $0x4] sm:$0x1] %vm1508_vm13, %v1496_v8 }
 0xa3a   :  { %1513 = vst.msk [vmem:[#allocation2 + $0x8] sm:$0x1] %vm1508_vm13, %v1481_v6  ;;  %v1534_v15 = vcombine.high %v1532_v9, %v1532_v9  ;;  %v1548_v16 = vrot.slane %v1532_v9, %v1457_v55  ;;  %v1555_v17 = vrot.slane %v1533_v10, %v1457_v55  ;;  %v1563_v18 = vcombine.high %v1541_v11, %v1541_v11 }
 0xa3b   :  { %1575 = vst.msk [vmem:[#allocation2 + $0x1] sm:$0x1] %vm1508_vm13, %v1541_v11  ;;  %v1499_v1 = vcombine.high %v1495_v12, %v1495_v12  ;;  %1512 = vst.msk [vmem:[#allocation2 + $0x6] sm:$0x1] %vm1508_vm13, %v1498_v14 }
 0xa3c   :  { %1514 = vst.msk [vmem:[#allocation2 + $0xa] sm:$0x1] %vm1508_vm13, %v1495_v12  ;;  %1515 = vst.msk [vmem:[#allocation2 + $0xc] sm:$0x1] %vm1508_vm13, %v1497_v13  ;;  %v1562_v19 = vrot.slane %v1534_v15, %v1457_v55  ;;  %v1564_v20 = vcombine.high %v1548_v16, %v1548_v16  ;;  %v1565_v21 = vcombine.high %v1555_v17, %v1555_v17 }
 0xa3d   :  { %1576 = vst.msk [vmem:[#allocation2 + $0x3] sm:$0x1] %vm1508_vm13, %v1555_v17  ;;  %1577 = vst.msk [vmem:[#allocation2 + $0x5] sm:$0x1] %vm1508_vm13, %v1563_v18 }
 0xa3e   :  { %1579 = vst.msk [vmem:[#allocation2 + $0x9] sm:$0x1] %vm1508_vm13, %v1548_v16  ;;  %1516 = vst.msk [vmem:[#allocation2 + $0xe] sm:$0x1] %vm1508_vm13, %v1499_v1  ;;  %v1566_v22 = vcombine.high %v1562_v19, %v1562_v19 }
 0xa3f   :  { %1578 = vst.msk [vmem:[#allocation2 + $0x7] sm:$0x1] %vm1508_vm13, %v1565_v21  ;;  %1580 = vst.msk [vmem:[#allocation2 + $0xb] sm:$0x1] %vm1508_vm13, %v1562_v19 }
 0xa40   :  { %1581 = vst.msk [vmem:[#allocation2 + $0xd] sm:$0x1] %vm1508_vm13, %v1564_v20  ;;  %1582 = vst.msk [vmem:[#allocation2 + $0xf] sm:$0x1] %vm1508_vm13, %v1566_v22 }
 0xa41   :  { %1930 = shalt.err (!%p1927_p4)
}
 0xa42   :  { %s1931_s30 = scalar_lea.hbm %s2421_s13, 256 }
 0xa43   :  { %p1932_p5 = scmp.ne.s32.totalorder %s2421_s13, %s1931_s30  ;;  %p1935_p6 = scmp.lt.u32.totalorder %s1931_s30, %s2421_s13 }
 0xa45   :  { %p1937_p7 = pnand %p1935_p6, %p1932_p5 }
 0xa47   :  { %1940 = shalt.err (!%p1937_p7)
}
 0xa48   :  { %s1961_s17 = smov 32   ;;  %s1962_s1 = smov 2  }
 0xa49   :  { %1594 = dma.vmem_to_hbm [thread:$0]  %s1589_s12, 256, %s2421_s13, [#allocation3], %s1961_s17, %s1961_s17, %s1962_s1  }
 0xa4a   :  { %1941 = dma.done.wait [#allocation3], 256  }
 0xa4b   :  { %1942 = vsyncadd [#allocation3], 4294967040 }
 0xa4c   :  { %1598 = vsyncpa [#allocation3], 1 }

</bundles_post_ra>
